<compile_context>
chip_gen: v5e
topology: v5e:2x2
jax: 0.10.0
libtpu: 0.0.40
codegen_flags: <defaults>
</compile_context>

<pallas_src>
import math

import jax
import jax.numpy as jnp
from jax.experimental import pallas as pl
from jax.experimental.pallas import tpu as pltpu

PAD_ID = 1
LN_EPS = 1e-5
NORM_EPS = 1e-12       # torch.nn.functional.normalize default eps
BLOCK_B = 8            # batch rows per grid step (multiple of 8: sublane-aligned)


def _gelu(x):
    # TODO(synk): torch nn.GELU defaults to the exact erf form; tanh approx
    # used here (the in-script reference matches it).
    return 0.5 * x * (1.0 + jnp.tanh(0.7978845608028654 * (x + 0.044715 * x * x * x)))


def _layernorm(x, gamma, beta):
    mean = jnp.mean(x, axis=-1, keepdims=True)
    var = jnp.mean((x - mean) ** 2, axis=-1, keepdims=True)
    return (x - mean) * jax.lax.rsqrt(var + LN_EPS) * gamma + beta


def unixcoder_kernel(
    x_ref, mask_ref,
    wq_ref, bq_ref, wk_ref, bk_ref, wv_ref, bv_ref, wo_ref, bo_ref,
    g1_ref, bln1_ref, w1_ref, b1_ref, w2_ref, b2_ref, g2_ref, bln2_ref,
    out_ref,
):
    Bt, S, H = x_ref.shape
    R = Bt * S

    x3 = x_ref[...]                              # [Bt, S, H]
    mask = mask_ref[...]                         # [Bt, S] (1.0 real, 0.0 PAD), S on lanes
    x = x3.reshape(R, H)                         # flatten batch*seq -> big MXU tiles

    # ---- QKV projections (flattened over batch*seq) ----
    q = jnp.dot(x, wq_ref[...], preferred_element_type=jnp.float32) + bq_ref[0]
    k = jnp.dot(x, wk_ref[...], preferred_element_type=jnp.float32) + bk_ref[0]
    v = jnp.dot(x, wv_ref[...], preferred_element_type=jnp.float32) + bv_ref[0]

    q3 = q.reshape(Bt, S, H)
    k3 = k.reshape(Bt, S, H)
    v3 = v.reshape(Bt, S, H)

    # ---- batched single-head attention (contract last dims, no k.T) ----
    scale = 1.0 / math.sqrt(H)
    scores = jnp.einsum("bqd,bkd->bqk", q3, k3,
                        preferred_element_type=jnp.float32) * scale      # [Bt, S, S]
    # attention_mask = inputs.ne(1): mask out PAD keys (broadcast over queries)
    scores = scores + (1.0 - mask)[:, None, :] * (-1e9)
    scores = scores - jnp.max(scores, axis=-1, keepdims=True)
    p = jnp.exp(scores)
    p = p * pl.reciprocal(jnp.sum(p, axis=-1, keepdims=True), approx=True)

    ctx = jnp.einsum("bqk,bkd->bqd", p, v3,
                     preferred_element_type=jnp.float32).reshape(R, H)
    attn = jnp.dot(ctx, wo_ref[...], preferred_element_type=jnp.float32) + bo_ref[0]
    h = _layernorm(x + attn, g1_ref[0], bln1_ref[0])                     # [R, H]

    # ---- feed forward ----
    f = _gelu(jnp.dot(h, w1_ref[...], preferred_element_type=jnp.float32) + b1_ref[0])
    f = jnp.dot(f, w2_ref[...], preferred_element_type=jnp.float32) + b2_ref[0]
    h = _layernorm(h + f, g2_ref[0], bln2_ref[0])                        # [R, H]

    # ---- masked mean pooling: (h * mask).sum(seq) / mask.sum(seq) ----
    h3 = h.reshape(Bt, S, H)
    pooled = jnp.einsum("bqs,bsh->bqh", mask[:, None, :], h3,
                        preferred_element_type=jnp.float32)[:, 0, :]      # [Bt, H]
    denom = jnp.sum(mask, axis=-1, keepdims=True)                         # [Bt, 1]
    # NOTE: an all-PAD row gives denom == 0 -> inf/NaN, same as the torch code.
    pooled = pooled * pl.reciprocal(denom, approx=True)   # scale error cancels in L2 norm

    # ---- L2 normalize (torch F.normalize, p=2, dim=1) ----
    sumsq = jnp.sum(pooled * pooled, axis=-1, keepdims=True)
    inv_norm = jax.lax.rsqrt(jnp.maximum(sumsq, NORM_EPS * NORM_EPS))
    out_ref[...] = pooled * inv_norm                                      # [Bt, H] lane-dense


@jax.jit
def unixcoder_forward(inputs, emb, params):
    """inputs: int32 [B, S] token ids; returns float32 [B, H] unit-norm embeddings."""
    B, S = inputs.shape
    H = emb.shape[-1]

    Bt = BLOCK_B
    B_pad = pl.cdiv(B, Bt) * Bt
    if B_pad != B:
        # Pad with token-id-0 rows (non-PAD) so dummy rows have a nonzero mask
        # sum; their outputs are sliced away below.
        pad_rows = jnp.zeros((B_pad - B, S), inputs.dtype)
        inputs = jnp.concatenate([inputs, pad_rows], axis=0)

    mask = (inputs != PAD_ID).astype(jnp.float32)     # [B_pad, S] lane-dense
    x = emb[inputs]                                   # [B_pad, S, H] embedding gather (glue)

    (wq, bq, wk, bk, wv, bv, wo, bo,
     g1, bln1, w1, b1, w2, b2, g2, bln2) = params
    F = w1.shape[-1]

    full = lambda shape: pl.BlockSpec(shape, lambda b, _s=shape: (0,) * len(_s))

    out = pl.pallas_call(
        unixcoder_kernel,
        out_shape=jax.ShapeDtypeStruct((B_pad, H), jnp.float32),
        grid=(B_pad // Bt,),
        in_specs=[
            pl.BlockSpec((Bt, S, H), lambda b: (b, 0, 0)),   # x
            pl.BlockSpec((Bt, S), lambda b: (b, 0)),         # mask (S on lane axis)
            full((H, H)), full((1, H)),                      # Wq, bq
            full((H, H)), full((1, H)),                      # Wk, bk
            full((H, H)), full((1, H)),                      # Wv, bv
            full((H, H)), full((1, H)),                      # Wo, bo
            full((1, H)), full((1, H)),                      # ln1 gamma, beta
            full((H, F)), full((1, F)),                      # W1, b1
            full((F, H)), full((1, H)),                      # W2, b2
            full((1, H)), full((1, H)),                      # ln2 gamma, beta
        ],
        out_specs=pl.BlockSpec((Bt, H), lambda b: (b, 0)),   # lane-dense [Bt, H] slab
        compiler_params=pltpu.CompilerParams(
            dimension_semantics=("parallel",),
            vmem_limit_bytes=64 * 1024 * 1024,
        ),
    )(x, mask, wq, bq, wk, bk, wv, bv, wo, bo,
      g1, bln1, w1, b1, w2, b2, g2, bln2)
    return out[:B]


def reference_forward(inputs, emb, params):
    """Pure-JAX reference of the same synthetic encoder + pooling + normalize."""
    (wq, bq, wk, bk, wv, bv, wo, bo,
     g1, bln1, w1, b1, w2, b2, g2, bln2) = params
    mask = (inputs != PAD_ID).astype(jnp.float32)
    x = emb[inputs]
    H = x.shape[-1]
    q = x @ wq + bq[0]
    k = x @ wk + bk[0]
    v = x @ wv + bv[0]
    scores = jnp.einsum("bqh,bkh->bqk", q, k) / jnp.sqrt(jnp.float32(H))
    scores = scores + (1.0 - mask[:, None, :]) * (-1e9)
    p = jax.nn.softmax(scores, axis=-1)
    attn = jnp.einsum("bqk,bkh->bqh", p, v) @ wo + bo[0]
    h = _layernorm(x + attn, g1[0], bln1[0])
    f = _gelu(h @ w1 + b1[0]) @ w2 + b2[0]
    h = _layernorm(h + f, g2[0], bln2[0])
    pooled = (h * mask[:, :, None]).sum(1) / mask.sum(-1)[:, None]
    norm = jnp.sqrt(jnp.sum(pooled * pooled, axis=1, keepdims=True))
    return pooled / jnp.maximum(norm, NORM_EPS)


def init_params(key, H, F):
    ks = jax.random.split(key, 8)
    s = 0.02
    wq = s * jax.random.normal(ks[0], (H, H), jnp.float32)
    wk = s * jax.random.normal(ks[1], (H, H), jnp.float32)
    wv = s * jax.random.normal(ks[2], (H, H), jnp.float32)
    wo = s * jax.random.normal(ks[3], (H, H), jnp.float32)
    w1 = s * jax.random.normal(ks[4], (H, F), jnp.float32)
    w2 = s * jax.random.normal(ks[5], (F, H), jnp.float32)
    bq = jnp.zeros((1, H), jnp.float32)
    bk = jnp.zeros((1, H), jnp.float32)
    bv = jnp.zeros((1, H), jnp.float32)
    bo = jnp.zeros((1, H), jnp.float32)
    b1 = jnp.zeros((1, F), jnp.float32)
    b2 = jnp.zeros((1, H), jnp.float32)
    g1 = jnp.ones((1, H), jnp.float32)
    bln1 = jnp.zeros((1, H), jnp.float32)
    g2 = jnp.ones((1, H), jnp.float32)
    bln2 = jnp.zeros((1, H), jnp.float32)
    return (wq, bq, wk, bk, wv, bv, wo, bo,
            g1, bln1, w1, b1, w2, b2, g2, bln2)


if __name__ == "__main__":
    # B=12 exercises the batch-padding path (padded to 16 -> 2 grid steps of 8).
    B, S, H, F, V = 12, 8, 32, 64, 50

    key = jax.random.PRNGKey(0)
    k_tok, k_emb, k_par = jax.random.split(key, 3)

    # Token ids; id==1 is the PAD token (as in inputs.ne(1)).
    inputs = jax.random.randint(k_tok, (B, S), 0, V, dtype=jnp.int32)
    inputs = inputs.at[:, 0].set(5)            # guarantee at least one real token per row
    inputs = inputs.at[0, S - 2:].set(PAD_ID)  # explicit padding tails
    inputs = inputs.at[1, S - 3:].set(PAD_ID)
    inputs = inputs.at[5, S - 4:].set(PAD_ID)

    emb = 0.02 * jax.random.normal(k_emb, (V, H), jnp.float32)
    params = init_params(k_par, H, F)

    out = unixcoder_forward(inputs, emb, params)
    out = jax.block_until_ready(out)

    ref = reference_forward(inputs, emb, params)
    assert out.shape == (B, H)
    # Tolerance accounts for EUP approximate-reciprocal softmax denominator.
    assert jnp.allclose(out, ref, rtol=1e-3, atol=1e-3), "mismatch vs reference"
    # sanity: output rows are unit-norm
    assert jnp.allclose(jnp.linalg.norm(out, axis=1), 1.0, atol=1e-3)

    print("KERNEL_OK")
</pallas_src>

<mosaic_0001>
module attributes {stable_mosaic.version = 11 : i64} {
  func.func @unixcoder_kernel(%arg0: i32, %arg1: memref<8x8x32xf32, #tpu.memory_space<vmem>>, %arg2: memref<8x8xf32, #tpu.memory_space<vmem>>, %arg3: memref<32x32xf32, #tpu.memory_space<vmem>>, %arg4: memref<1x32xf32, #tpu.memory_space<vmem>>, %arg5: memref<32x32xf32, #tpu.memory_space<vmem>>, %arg6: memref<1x32xf32, #tpu.memory_space<vmem>>, %arg7: memref<32x32xf32, #tpu.memory_space<vmem>>, %arg8: memref<1x32xf32, #tpu.memory_space<vmem>>, %arg9: memref<32x32xf32, #tpu.memory_space<vmem>>, %arg10: memref<1x32xf32, #tpu.memory_space<vmem>>, %arg11: memref<1x32xf32, #tpu.memory_space<vmem>>, %arg12: memref<1x32xf32, #tpu.memory_space<vmem>>, %arg13: memref<32x64xf32, #tpu.memory_space<vmem>>, %arg14: memref<1x64xf32, #tpu.memory_space<vmem>>, %arg15: memref<64x32xf32, #tpu.memory_space<vmem>>, %arg16: memref<1x32xf32, #tpu.memory_space<vmem>>, %arg17: memref<1x32xf32, #tpu.memory_space<vmem>>, %arg18: memref<1x32xf32, #tpu.memory_space<vmem>>, %arg19: memref<8x32xf32, #tpu.memory_space<vmem>>) attributes {dimension_semantics = [#tpu.dimension_semantics<parallel>], iteration_bounds = array<i64: 2>, scalar_prefetch = 0 : i64, scratch_operands = 0 : i64, tpu.core_type = #tpu.core_type<tc>, window_params = [{transform_indices = @transform_0, window_bounds = array<i64: 8, 8, 32>}, {transform_indices = @transform_1, window_bounds = array<i64: 8, 8>}, {pipeline_mode = #tpu.pipeline_mode<synchronous>, transform_indices = @transform_2, window_bounds = array<i64: 32, 32>}, {pipeline_mode = #tpu.pipeline_mode<synchronous>, transform_indices = @transform_3, window_bounds = array<i64: 1, 32>}, {pipeline_mode = #tpu.pipeline_mode<synchronous>, transform_indices = @transform_4, window_bounds = array<i64: 32, 32>}, {pipeline_mode = #tpu.pipeline_mode<synchronous>, transform_indices = @transform_5, window_bounds = array<i64: 1, 32>}, {pipeline_mode = #tpu.pipeline_mode<synchronous>, transform_indices = @transform_6, window_bounds = array<i64: 32, 32>}, {pipeline_mode = #tpu.pipeline_mode<synchronous>, transform_indices = @transform_7, window_bounds = array<i64: 1, 32>}, {pipeline_mode = #tpu.pipeline_mode<synchronous>, transform_indices = @transform_8, window_bounds = array<i64: 32, 32>}, {pipeline_mode = #tpu.pipeline_mode<synchronous>, transform_indices = @transform_9, window_bounds = array<i64: 1, 32>}, {pipeline_mode = #tpu.pipeline_mode<synchronous>, transform_indices = @transform_10, window_bounds = array<i64: 1, 32>}, {pipeline_mode = #tpu.pipeline_mode<synchronous>, transform_indices = @transform_11, window_bounds = array<i64: 1, 32>}, {pipeline_mode = #tpu.pipeline_mode<synchronous>, transform_indices = @transform_12, window_bounds = array<i64: 32, 64>}, {pipeline_mode = #tpu.pipeline_mode<synchronous>, transform_indices = @transform_13, window_bounds = array<i64: 1, 64>}, {pipeline_mode = #tpu.pipeline_mode<synchronous>, transform_indices = @transform_14, window_bounds = array<i64: 64, 32>}, {pipeline_mode = #tpu.pipeline_mode<synchronous>, transform_indices = @transform_15, window_bounds = array<i64: 1, 32>}, {pipeline_mode = #tpu.pipeline_mode<synchronous>, transform_indices = @transform_16, window_bounds = array<i64: 1, 32>}, {pipeline_mode = #tpu.pipeline_mode<synchronous>, transform_indices = @transform_17, window_bounds = array<i64: 1, 32>}, {transform_indices = @transform_18, window_bounds = array<i64: 8, 32>}]} {
    %c0 = arith.constant 0 : index
    %c0_0 = arith.constant 0 : index
    %c0_1 = arith.constant 0 : index
    %0 = vector.load %arg1[%c0, %c0_0, %c0_1] : memref<8x8x32xf32, #tpu.memory_space<vmem>>, vector<8x8x32xf32>
    %c0_2 = arith.constant 0 : index
    %c0_3 = arith.constant 0 : index
    %1 = vector.load %arg2[%c0_2, %c0_3] : memref<8x8xf32, #tpu.memory_space<vmem>>, vector<8x8xf32>
    %2 = vector.shape_cast %0 : vector<8x8x32xf32> to vector<64x32xf32>
    %c0_4 = arith.constant 0 : index
    %c0_5 = arith.constant 0 : index
    %3 = vector.load %arg3[%c0_4, %c0_5] : memref<32x32xf32, #tpu.memory_space<vmem>>, vector<32x32xf32>
    %cst = arith.constant dense<0.000000e+00> : vector<64x32xf32>
    %4 = tpu.matmul %2, %3, %cst {dimension_numbers = #tpu.dot_dimension_numbers<[1], [0], [0], [1], [0, 0, 1, 1], [], []>} : vector<64x32xf32>, vector<32x32xf32>, vector<64x32xf32> -> vector<64x32xf32>
    %c0_6 = arith.constant 0 : index
    %c0_7 = arith.constant 0 : index
    %5 = vector.load %arg4[%c0_6, %c0_7] : memref<1x32xf32, #tpu.memory_space<vmem>>, vector<1x32xf32>
    %6 = vector.shape_cast %5 : vector<1x32xf32> to vector<32xf32>
    %7 = vector.shape_cast %6 : vector<32xf32> to vector<1x32xf32>
    %8 = vector.broadcast %7 : vector<1x32xf32> to vector<64x32xf32>
    %9 = arith.addf %4, %8 : vector<64x32xf32>
    %c0_8 = arith.constant 0 : index
    %c0_9 = arith.constant 0 : index
    %10 = vector.load %arg5[%c0_8, %c0_9] : memref<32x32xf32, #tpu.memory_space<vmem>>, vector<32x32xf32>
    %cst_10 = arith.constant dense<0.000000e+00> : vector<64x32xf32>
    %11 = tpu.matmul %2, %10, %cst_10 {dimension_numbers = #tpu.dot_dimension_numbers<[1], [0], [0], [1], [0, 0, 1, 1], [], []>} : vector<64x32xf32>, vector<32x32xf32>, vector<64x32xf32> -> vector<64x32xf32>
    %c0_11 = arith.constant 0 : index
    %c0_12 = arith.constant 0 : index
    %12 = vector.load %arg6[%c0_11, %c0_12] : memref<1x32xf32, #tpu.memory_space<vmem>>, vector<1x32xf32>
    %13 = vector.shape_cast %12 : vector<1x32xf32> to vector<32xf32>
    %14 = vector.shape_cast %13 : vector<32xf32> to vector<1x32xf32>
    %15 = vector.broadcast %14 : vector<1x32xf32> to vector<64x32xf32>
    %16 = arith.addf %11, %15 : vector<64x32xf32>
    %c0_13 = arith.constant 0 : index
    %c0_14 = arith.constant 0 : index
    %17 = vector.load %arg7[%c0_13, %c0_14] : memref<32x32xf32, #tpu.memory_space<vmem>>, vector<32x32xf32>
    %cst_15 = arith.constant dense<0.000000e+00> : vector<64x32xf32>
    %18 = tpu.matmul %2, %17, %cst_15 {dimension_numbers = #tpu.dot_dimension_numbers<[1], [0], [0], [1], [0, 0, 1, 1], [], []>} : vector<64x32xf32>, vector<32x32xf32>, vector<64x32xf32> -> vector<64x32xf32>
    %c0_16 = arith.constant 0 : index
    %c0_17 = arith.constant 0 : index
    %19 = vector.load %arg8[%c0_16, %c0_17] : memref<1x32xf32, #tpu.memory_space<vmem>>, vector<1x32xf32>
    %20 = vector.shape_cast %19 : vector<1x32xf32> to vector<32xf32>
    %21 = vector.shape_cast %20 : vector<32xf32> to vector<1x32xf32>
    %22 = vector.broadcast %21 : vector<1x32xf32> to vector<64x32xf32>
    %23 = arith.addf %18, %22 : vector<64x32xf32>
    %24 = vector.shape_cast %9 : vector<64x32xf32> to vector<8x8x32xf32>
    %25 = vector.shape_cast %16 : vector<64x32xf32> to vector<8x8x32xf32>
    %26 = vector.shape_cast %23 : vector<64x32xf32> to vector<8x8x32xf32>
    "tpu.trace_start"() <{level = 10 : i32, message = "bqd,bkd->bqk"}> : () -> ()
    %cst_18 = arith.constant dense<0.000000e+00> : vector<8x8x8xf32>
    %27 = tpu.matmul %24, %25, %cst_18 {dimension_numbers = #tpu.dot_dimension_numbers<[2], [2], [1], [1], [0, 0, 0, 1, 1, 1], [0], [0]>} : vector<8x8x32xf32>, vector<8x8x32xf32>, vector<8x8x8xf32> -> vector<8x8x8xf32>
    "tpu.trace_stop"() : () -> ()
    %cst_19 = arith.constant 0.176776692 : f32
    %28 = vector.broadcast %cst_19 : f32 to vector<8x8x8xf32>
    %29 = arith.mulf %27, %28 : vector<8x8x8xf32>
    %cst_20 = arith.constant 1.000000e+00 : f32
    %30 = vector.broadcast %cst_20 : f32 to vector<8x8xf32>
    %31 = arith.subf %30, %1 : vector<8x8xf32>
    %32 = vector.shape_cast %31 : vector<8x8xf32> to vector<8x1x8xf32>
    %cst_21 = arith.constant -1.000000e+09 : f32
    %33 = vector.broadcast %cst_21 : f32 to vector<8x1x8xf32>
    %34 = arith.mulf %32, %33 : vector<8x1x8xf32>
    %35 = vector.broadcast %34 : vector<8x1x8xf32> to vector<8x8x8xf32>
    %36 = arith.addf %29, %35 : vector<8x8x8xf32>
    %cst_22 = arith.constant dense<0xFF800000> : vector<8x8xf32>
    %37 = vector.multi_reduction <maximumf>, %36, %cst_22 [2] : vector<8x8x8xf32> to vector<8x8xf32>
    %38 = vector.shape_cast %37 : vector<8x8xf32> to vector<8x8x1xf32>
    %39 = vector.broadcast %38 : vector<8x8x1xf32> to vector<8x8x8xf32>
    %40 = arith.subf %36, %39 : vector<8x8x8xf32>
    %41 = math.exp %40 : vector<8x8x8xf32>
    %cst_23 = arith.constant dense<0.000000e+00> : vector<8x8xf32>
    %42 = vector.multi_reduction <add>, %41, %cst_23 [2] : vector<8x8x8xf32> to vector<8x8xf32>
    %43 = vector.shape_cast %42 : vector<8x8xf32> to vector<8x8x1xf32>
    %44 = tpu.reciprocal %43 {approx = true} : vector<8x8x1xf32> -> vector<8x8x1xf32>
    %45 = vector.broadcast %44 : vector<8x8x1xf32> to vector<8x8x8xf32>
    %46 = arith.mulf %41, %45 : vector<8x8x8xf32>
    "tpu.trace_start"() <{level = 10 : i32, message = "bqk,bkd->bqd"}> : () -> ()
    %cst_24 = arith.constant dense<0.000000e+00> : vector<8x8x32xf32>
    %47 = tpu.matmul %46, %26, %cst_24 {dimension_numbers = #tpu.dot_dimension_numbers<[2], [1], [1], [2], [0, 0, 0, 1, 1, 2], [0], [0]>} : vector<8x8x8xf32>, vector<8x8x32xf32>, vector<8x8x32xf32> -> vector<8x8x32xf32>
    "tpu.trace_stop"() : () -> ()
    %48 = vector.shape_cast %47 : vector<8x8x32xf32> to vector<64x32xf32>
    %c0_25 = arith.constant 0 : index
    %c0_26 = arith.constant 0 : index
    %49 = vector.load %arg9[%c0_25, %c0_26] : memref<32x32xf32, #tpu.memory_space<vmem>>, vector<32x32xf32>
    %cst_27 = arith.constant dense<0.000000e+00> : vector<64x32xf32>
    %50 = tpu.matmul %48, %49, %cst_27 {dimension_numbers = #tpu.dot_dimension_numbers<[1], [0], [0], [1], [0, 0, 1, 1], [], []>} : vector<64x32xf32>, vector<32x32xf32>, vector<64x32xf32> -> vector<64x32xf32>
    %c0_28 = arith.constant 0 : index
    %c0_29 = arith.constant 0 : index
    %51 = vector.load %arg10[%c0_28, %c0_29] : memref<1x32xf32, #tpu.memory_space<vmem>>, vector<1x32xf32>
    %52 = vector.shape_cast %51 : vector<1x32xf32> to vector<32xf32>
    %53 = vector.shape_cast %52 : vector<32xf32> to vector<1x32xf32>
    %54 = vector.broadcast %53 : vector<1x32xf32> to vector<64x32xf32>
    %55 = arith.addf %50, %54 : vector<64x32xf32>
    %56 = arith.addf %2, %55 : vector<64x32xf32>
    %c0_30 = arith.constant 0 : index
    %c0_31 = arith.constant 0 : index
    %57 = vector.load %arg11[%c0_30, %c0_31] : memref<1x32xf32, #tpu.memory_space<vmem>>, vector<1x32xf32>
    %58 = vector.shape_cast %57 : vector<1x32xf32> to vector<32xf32>
    %c0_32 = arith.constant 0 : index
    %c0_33 = arith.constant 0 : index
    %59 = vector.load %arg12[%c0_32, %c0_33] : memref<1x32xf32, #tpu.memory_space<vmem>>, vector<1x32xf32>
    %60 = vector.shape_cast %59 : vector<1x32xf32> to vector<32xf32>
    %cst_34 = arith.constant dense<0.000000e+00> : vector<64xf32>
    %61 = vector.multi_reduction <add>, %56, %cst_34 [1] : vector<64x32xf32> to vector<64xf32>
    %62 = vector.shape_cast %61 : vector<64xf32> to vector<64x1xf32>
    %cst_35 = arith.constant 3.200000e+01 : f32
    %63 = vector.broadcast %cst_35 : f32 to vector<64x1xf32>
    %64 = arith.divf %62, %63 : vector<64x1xf32>
    %65 = vector.broadcast %64 : vector<64x1xf32> to vector<64x32xf32>
    %66 = arith.subf %56, %65 : vector<64x32xf32>
    %67 = arith.mulf %66, %66 : vector<64x32xf32>
    %cst_36 = arith.constant dense<0.000000e+00> : vector<64xf32>
    %68 = vector.multi_reduction <add>, %67, %cst_36 [1] : vector<64x32xf32> to vector<64xf32>
    %69 = vector.shape_cast %68 : vector<64xf32> to vector<64x1xf32>
    %cst_37 = arith.constant 3.200000e+01 : f32
    %70 = vector.broadcast %cst_37 : f32 to vector<64x1xf32>
    %71 = arith.divf %69, %70 : vector<64x1xf32>
    %72 = vector.broadcast %64 : vector<64x1xf32> to vector<64x32xf32>
    %73 = arith.subf %56, %72 : vector<64x32xf32>
    %cst_38 = arith.constant 9.99999974E-6 : f32
    %74 = vector.broadcast %cst_38 : f32 to vector<64x1xf32>
    %75 = arith.addf %71, %74 : vector<64x1xf32>
    %76 = math.rsqrt %75 : vector<64x1xf32>
    %77 = vector.broadcast %76 : vector<64x1xf32> to vector<64x32xf32>
    %78 = arith.mulf %73, %77 : vector<64x32xf32>
    %79 = vector.shape_cast %58 : vector<32xf32> to vector<1x32xf32>
    %80 = vector.broadcast %79 : vector<1x32xf32> to vector<64x32xf32>
    %81 = arith.mulf %78, %80 : vector<64x32xf32>
    %82 = vector.shape_cast %60 : vector<32xf32> to vector<1x32xf32>
    %83 = vector.broadcast %82 : vector<1x32xf32> to vector<64x32xf32>
    %84 = arith.addf %81, %83 : vector<64x32xf32>
    %c0_39 = arith.constant 0 : index
    %c0_40 = arith.constant 0 : index
    %85 = vector.load %arg13[%c0_39, %c0_40] : memref<32x64xf32, #tpu.memory_space<vmem>>, vector<32x64xf32>
    %cst_41 = arith.constant dense<0.000000e+00> : vector<64x64xf32>
    %86 = tpu.matmul %84, %85, %cst_41 {dimension_numbers = #tpu.dot_dimension_numbers<[1], [0], [0], [1], [0, 0, 1, 1], [], []>} : vector<64x32xf32>, vector<32x64xf32>, vector<64x64xf32> -> vector<64x64xf32>
    %c0_42 = arith.constant 0 : index
    %c0_43 = arith.constant 0 : index
    %87 = vector.load %arg14[%c0_42, %c0_43] : memref<1x64xf32, #tpu.memory_space<vmem>>, vector<1x64xf32>
    %88 = vector.shape_cast %87 : vector<1x64xf32> to vector<64xf32>
    %89 = vector.shape_cast %88 : vector<64xf32> to vector<1x64xf32>
    %90 = vector.broadcast %89 : vector<1x64xf32> to vector<64x64xf32>
    %91 = arith.addf %86, %90 : vector<64x64xf32>
    %cst_44 = arith.constant 5.000000e-01 : f32
    %92 = vector.broadcast %cst_44 : f32 to vector<64x64xf32>
    %93 = arith.mulf %92, %91 : vector<64x64xf32>
    %cst_45 = arith.constant 4.471500e-02 : f32
    %94 = vector.broadcast %cst_45 : f32 to vector<64x64xf32>
    %95 = arith.mulf %94, %91 : vector<64x64xf32>
    %96 = arith.mulf %95, %91 : vector<64x64xf32>
    %97 = arith.mulf %96, %91 : vector<64x64xf32>
    %98 = arith.addf %91, %97 : vector<64x64xf32>
    %cst_46 = arith.constant 0.797884583 : f32
    %99 = vector.broadcast %cst_46 : f32 to vector<64x64xf32>
    %100 = arith.mulf %99, %98 : vector<64x64xf32>
    %101 = math.tanh %100 : vector<64x64xf32>
    %cst_47 = arith.constant 1.000000e+00 : f32
    %102 = vector.broadcast %cst_47 : f32 to vector<64x64xf32>
    %103 = arith.addf %102, %101 : vector<64x64xf32>
    %104 = arith.mulf %93, %103 : vector<64x64xf32>
    %c0_48 = arith.constant 0 : index
    %c0_49 = arith.constant 0 : index
    %105 = vector.load %arg15[%c0_48, %c0_49] : memref<64x32xf32, #tpu.memory_space<vmem>>, vector<64x32xf32>
    %cst_50 = arith.constant dense<0.000000e+00> : vector<64x32xf32>
    %106 = tpu.matmul %104, %105, %cst_50 {dimension_numbers = #tpu.dot_dimension_numbers<[1], [0], [0], [1], [0, 0, 1, 1], [], []>} : vector<64x64xf32>, vector<64x32xf32>, vector<64x32xf32> -> vector<64x32xf32>
    %c0_51 = arith.constant 0 : index
    %c0_52 = arith.constant 0 : index
    %107 = vector.load %arg16[%c0_51, %c0_52] : memref<1x32xf32, #tpu.memory_space<vmem>>, vector<1x32xf32>
    %108 = vector.shape_cast %107 : vector<1x32xf32> to vector<32xf32>
    %109 = vector.shape_cast %108 : vector<32xf32> to vector<1x32xf32>
    %110 = vector.broadcast %109 : vector<1x32xf32> to vector<64x32xf32>
    %111 = arith.addf %106, %110 : vector<64x32xf32>
    %112 = arith.addf %84, %111 : vector<64x32xf32>
    %c0_53 = arith.constant 0 : index
    %c0_54 = arith.constant 0 : index
    %113 = vector.load %arg17[%c0_53, %c0_54] : memref<1x32xf32, #tpu.memory_space<vmem>>, vector<1x32xf32>
    %114 = vector.shape_cast %113 : vector<1x32xf32> to vector<32xf32>
    %c0_55 = arith.constant 0 : index
    %c0_56 = arith.constant 0 : index
    %115 = vector.load %arg18[%c0_55, %c0_56] : memref<1x32xf32, #tpu.memory_space<vmem>>, vector<1x32xf32>
    %116 = vector.shape_cast %115 : vector<1x32xf32> to vector<32xf32>
    %cst_57 = arith.constant dense<0.000000e+00> : vector<64xf32>
    %117 = vector.multi_reduction <add>, %112, %cst_57 [1] : vector<64x32xf32> to vector<64xf32>
    %118 = vector.shape_cast %117 : vector<64xf32> to vector<64x1xf32>
    %cst_58 = arith.constant 3.200000e+01 : f32
    %119 = vector.broadcast %cst_58 : f32 to vector<64x1xf32>
    %120 = arith.divf %118, %119 : vector<64x1xf32>
    %121 = vector.broadcast %120 : vector<64x1xf32> to vector<64x32xf32>
    %122 = arith.subf %112, %121 : vector<64x32xf32>
    %123 = arith.mulf %122, %122 : vector<64x32xf32>
    %cst_59 = arith.constant dense<0.000000e+00> : vector<64xf32>
    %124 = vector.multi_reduction <add>, %123, %cst_59 [1] : vector<64x32xf32> to vector<64xf32>
    %125 = vector.shape_cast %124 : vector<64xf32> to vector<64x1xf32>
    %cst_60 = arith.constant 3.200000e+01 : f32
    %126 = vector.broadcast %cst_60 : f32 to vector<64x1xf32>
    %127 = arith.divf %125, %126 : vector<64x1xf32>
    %128 = vector.broadcast %120 : vector<64x1xf32> to vector<64x32xf32>
    %129 = arith.subf %112, %128 : vector<64x32xf32>
    %cst_61 = arith.constant 9.99999974E-6 : f32
    %130 = vector.broadcast %cst_61 : f32 to vector<64x1xf32>
    %131 = arith.addf %127, %130 : vector<64x1xf32>
    %132 = math.rsqrt %131 : vector<64x1xf32>
    %133 = vector.broadcast %132 : vector<64x1xf32> to vector<64x32xf32>
    %134 = arith.mulf %129, %133 : vector<64x32xf32>
    %135 = vector.shape_cast %114 : vector<32xf32> to vector<1x32xf32>
    %136 = vector.broadcast %135 : vector<1x32xf32> to vector<64x32xf32>
    %137 = arith.mulf %134, %136 : vector<64x32xf32>
    %138 = vector.shape_cast %116 : vector<32xf32> to vector<1x32xf32>
    %139 = vector.broadcast %138 : vector<1x32xf32> to vector<64x32xf32>
    %140 = arith.addf %137, %139 : vector<64x32xf32>
    %141 = vector.shape_cast %140 : vector<64x32xf32> to vector<8x8x32xf32>
    %142 = vector.shape_cast %1 : vector<8x8xf32> to vector<8x1x8xf32>
    "tpu.trace_start"() <{level = 10 : i32, message = "bqs,bsh->bqh"}> : () -> ()
    %cst_62 = arith.constant dense<0.000000e+00> : vector<8x1x32xf32>
    %143 = tpu.matmul %142, %141, %cst_62 {dimension_numbers = #tpu.dot_dimension_numbers<[2], [1], [1], [2], [0, 0, 0, 1, 1, 2], [0], [0]>} : vector<8x1x8xf32>, vector<8x8x32xf32>, vector<8x1x32xf32> -> vector<8x1x32xf32>
    "tpu.trace_stop"() : () -> ()
    %144 = vector.shape_cast %143 : vector<8x1x32xf32> to vector<8x32xf32>
    %cst_63 = arith.constant dense<0.000000e+00> : vector<8xf32>
    %145 = vector.multi_reduction <add>, %1, %cst_63 [1] : vector<8x8xf32> to vector<8xf32>
    %146 = vector.shape_cast %145 : vector<8xf32> to vector<8x1xf32>
    %147 = tpu.reciprocal %146 {approx = true} : vector<8x1xf32> -> vector<8x1xf32>
    %148 = vector.broadcast %147 : vector<8x1xf32> to vector<8x32xf32>
    %149 = arith.mulf %144, %148 : vector<8x32xf32>
    %150 = arith.mulf %149, %149 : vector<8x32xf32>
    %cst_64 = arith.constant dense<0.000000e+00> : vector<8xf32>
    %151 = vector.multi_reduction <add>, %150, %cst_64 [1] : vector<8x32xf32> to vector<8xf32>
    %152 = vector.shape_cast %151 : vector<8xf32> to vector<8x1xf32>
    %cst_65 = arith.constant 1.000000e-24 : f32
    %153 = vector.broadcast %cst_65 : f32 to vector<8x1xf32>
    %154 = arith.maximumf %152, %153 : vector<8x1xf32>
    %155 = math.rsqrt %154 : vector<8x1xf32>
    %156 = vector.broadcast %155 : vector<8x1xf32> to vector<8x32xf32>
    %157 = arith.mulf %149, %156 : vector<8x32xf32>
    %c0_66 = arith.constant 0 : index
    %c0_67 = arith.constant 0 : index
    %158 = vector.load %arg19[%c0_66, %c0_67] : memref<8x32xf32, #tpu.memory_space<vmem>>, vector<8x32xf32>
    tpu.vector_store %arg19[%c0_66, %c0_67], %157 {strides = array<i32>} : memref<8x32xf32, #tpu.memory_space<vmem>>, vector<8x32xf32>,
    return
  }
  func.func @transform_0(%arg0: i32) -> (i32, i32, i32) {
    %c0_i32 = arith.constant 0 : i32
    %c0_i32_0 = arith.constant 0 : i32
    %c0_i32_1 = arith.constant 0 : i32
    return %arg0, %c0_i32, %c0_i32_0 : i32, i32, i32
  }
  func.func @transform_1(%arg0: i32) -> (i32, i32) {
    %c0_i32 = arith.constant 0 : i32
    %c0_i32_0 = arith.constant 0 : i32
    return %arg0, %c0_i32 : i32, i32
  }
  func.func @transform_2(%arg0: i32) -> (i32, i32) {
    %c0_i32 = arith.constant 0 : i32
    %c0_i32_0 = arith.constant 0 : i32
    %c0_i32_1 = arith.constant 0 : i32
    return %c0_i32, %c0_i32_0 : i32, i32
  }
  func.func @transform_3(%arg0: i32) -> (i32, i32) {
    %c0_i32 = arith.constant 0 : i32
    %c0_i32_0 = arith.constant 0 : i32
    %c0_i32_1 = arith.constant 0 : i32
    return %c0_i32, %c0_i32_0 : i32, i32
  }
  func.func @transform_4(%arg0: i32) -> (i32, i32) {
    %c0_i32 = arith.constant 0 : i32
    %c0_i32_0 = arith.constant 0 : i32
    %c0_i32_1 = arith.constant 0 : i32
    return %c0_i32, %c0_i32_0 : i32, i32
  }
  func.func @transform_5(%arg0: i32) -> (i32, i32) {
    %c0_i32 = arith.constant 0 : i32
    %c0_i32_0 = arith.constant 0 : i32
    %c0_i32_1 = arith.constant 0 : i32
    return %c0_i32, %c0_i32_0 : i32, i32
  }
  func.func @transform_6(%arg0: i32) -> (i32, i32) {
    %c0_i32 = arith.constant 0 : i32
    %c0_i32_0 = arith.constant 0 : i32
    %c0_i32_1 = arith.constant 0 : i32
    return %c0_i32, %c0_i32_0 : i32, i32
  }
  func.func @transform_7(%arg0: i32) -> (i32, i32) {
    %c0_i32 = arith.constant 0 : i32
    %c0_i32_0 = arith.constant 0 : i32
    %c0_i32_1 = arith.constant 0 : i32
    return %c0_i32, %c0_i32_0 : i32, i32
  }
  func.func @transform_8(%arg0: i32) -> (i32, i32) {
    %c0_i32 = arith.constant 0 : i32
    %c0_i32_0 = arith.constant 0 : i32
    %c0_i32_1 = arith.constant 0 : i32
    return %c0_i32, %c0_i32_0 : i32, i32
  }
  func.func @transform_9(%arg0: i32) -> (i32, i32) {
    %c0_i32 = arith.constant 0 : i32
    %c0_i32_0 = arith.constant 0 : i32
    %c0_i32_1 = arith.constant 0 : i32
    return %c0_i32, %c0_i32_0 : i32, i32
  }
  func.func @transform_10(%arg0: i32) -> (i32, i32) {
    %c0_i32 = arith.constant 0 : i32
    %c0_i32_0 = arith.constant 0 : i32
    %c0_i32_1 = arith.constant 0 : i32
    return %c0_i32, %c0_i32_0 : i32, i32
  }
  func.func @transform_11(%arg0: i32) -> (i32, i32) {
    %c0_i32 = arith.constant 0 : i32
    %c0_i32_0 = arith.constant 0 : i32
    %c0_i32_1 = arith.constant 0 : i32
    return %c0_i32, %c0_i32_0 : i32, i32
  }
  func.func @transform_12(%arg0: i32) -> (i32, i32) {
    %c0_i32 = arith.constant 0 : i32
    %c0_i32_0 = arith.constant 0 : i32
    %c0_i32_1 = arith.constant 0 : i32
    return %c0_i32, %c0_i32_0 : i32, i32
  }
  func.func @transform_13(%arg0: i32) -> (i32, i32) {
    %c0_i32 = arith.constant 0 : i32
    %c0_i32_0 = arith.constant 0 : i32
    %c0_i32_1 = arith.constant 0 : i32
    return %c0_i32, %c0_i32_0 : i32, i32
  }
  func.func @transform_14(%arg0: i32) -> (i32, i32) {
    %c0_i32 = arith.constant 0 : i32
    %c0_i32_0 = arith.constant 0 : i32
    %c0_i32_1 = arith.constant 0 : i32
    return %c0_i32, %c0_i32_0 : i32, i32
  }
  func.func @transform_15(%arg0: i32) -> (i32, i32) {
    %c0_i32 = arith.constant 0 : i32
    %c0_i32_0 = arith.constant 0 : i32
    %c0_i32_1 = arith.constant 0 : i32
    return %c0_i32, %c0_i32_0 : i32, i32
  }
  func.func @transform_16(%arg0: i32) -> (i32, i32) {
    %c0_i32 = arith.constant 0 : i32
    %c0_i32_0 = arith.constant 0 : i32
    %c0_i32_1 = arith.constant 0 : i32
    return %c0_i32, %c0_i32_0 : i32, i32
  }
  func.func @transform_17(%arg0: i32) -> (i32, i32) {
    %c0_i32 = arith.constant 0 : i32
    %c0_i32_0 = arith.constant 0 : i32
    %c0_i32_1 = arith.constant 0 : i32
    return %c0_i32, %c0_i32_0 : i32, i32
  }
  func.func @transform_18(%arg0: i32) -> (i32, i32) {
    %c0_i32 = arith.constant 0 : i32
    %c0_i32_0 = arith.constant 0 : i32
    return %arg0, %c0_i32 : i32, i32
  }
}

</mosaic_0001>

<bundles_post_ra>
// kernel: unixcoder_forward.1
= control target key start
LH: loop header
LB: loop body
LE: loop exit
PB: predicated region body
PF: predicated region fallthrough
CT: control target
= control target key end

     0   :  { %s3520_s0 = inlined_call_operand.vmem [shape: f32[16,8,32], index: 0, kind: input, shape index: {}]   ;;  %s3521_s1 = inlined_call_operand.vmem [shape: f32[16,8], index: 1, kind: input, shape index: {}]   ;;  %s3522_s2 = inlined_call_operand.vmem [shape: f32[32,32], index: 2, kind: input, shape index: {}]   ;;  %s3523_s3 = inlined_call_operand.vmem [shape: f32[1,32], index: 3, kind: input, shape index: {}]   ;;  %s3524_s4 = inlined_call_operand.vmem [shape: f32[32,32], index: 4, kind: input, shape index: {}]   ;;  %s3525_s5 = inlined_call_operand.vmem [shape: f32[1,32], index: 5, kind: input, shape index: {}]   ;;  %s3526_s6 = inlined_call_operand.vmem [shape: f32[32,32], index: 6, kind: input, shape index: {}]   ;;  %s3527_s7 = inlined_call_operand.vmem [shape: f32[1,32], index: 7, kind: input, shape index: {}]   ;;  %s3528_s8 = inlined_call_operand.vmem [shape: f32[32,32], index: 8, kind: input, shape index: {}]   ;;  %s3529_s9 = inlined_call_operand.vmem [shape: f32[1,32], index: 9, kind: input, shape index: {}]   ;;  %s3530_s10 = inlined_call_operand.vmem [shape: f32[1,32], index: 10, kind: input, shape index: {}]   ;;  %s3531_s11 = inlined_call_operand.vmem [shape: f32[1,32], index: 11, kind: input, shape index: {}]   ;;  %s3532_s12 = inlined_call_operand.vmem [shape: f32[32,64], index: 12, kind: input, shape index: {}]   ;;  %s3533_s13 = inlined_call_operand.vmem [shape: f32[1,64], index: 13, kind: input, shape index: {}]   ;;  %s3534_s14 = inlined_call_operand.vmem [shape: f32[64,32], index: 14, kind: input, shape index: {}]   ;;  %s3535_s15 = inlined_call_operand.vmem [shape: f32[1,32], index: 15, kind: input, shape index: {}]   ;;  %s3536_s16 = inlined_call_operand.vmem [shape: f32[1,32], index: 16, kind: input, shape index: {}]   ;;  %s3537_s17 = inlined_call_operand.vmem [shape: f32[1,32], index: 17, kind: input, shape index: {}]   ;;  %s3538_s18 = inlined_call_operand.hbm [shape: f32[16,32], index: 18, kind: output, shape index: {}]  }
   0x1   :  { %3548 = sst [smem:[#allocation12_spill]] %s3520_s0 }
   0x2   :  { %3549 = sst [smem:[#allocation13_spill]] %s3521_s1 }
   0x3   :  { %3550 = sst [smem:[#allocation14_spill]] %s3522_s2 }
   0x4   :  { %3551 = sst [smem:[#allocation15_spill]] %s3523_s3 }
   0x5   :  { %3552 = sst [smem:[#allocation16_spill]] %s3524_s4 }
   0x6   :  { %23 = vsyncpa [#allocation3], 0 }
   0x7   :  { %25 = vsyncpa [#allocation3 + $0x1], 0  ;;  %s2826_s27 = smov 0   ;;  %s2828_s28 = smov 0  }
   0x8   :  { %s2830_s29 = smov 0   ;;  %s2832_s30 = smov 0  }
   0x9 LB: > { %3553 = sst [smem:[#allocation5_spill]] %s2716_s27  ;;  %s2847_s0 = sadd.s32 4294967295, %s2728_s30   ;;  %s2728_s30 = sphi %s2832_s30, %s3571_s30   ;;  %s2724_s29 = sphi %s2830_s29, %s3573_s29   ;;  %s2720_s28 = sphi %s2828_s28, %s3575_s28   ;;  %s2716_s27 = sphi %s2826_s27, %s3574_s27  }
   0xa   : > { %3554 = sst [smem:[#allocation6_spill]] %s2724_s29  ;;  %s2437_s19 = sadd.s32 4294967294, %s2728_s30  }
   0xb   : > { %3555 = sst [smem:[#allocation7_spill]] %s2728_s30  ;;  %s2851_s1 = sadd.s32 1, %s2728_s30  }
   0xc   : > { %3556 = sst [smem:[#allocation8_spill]] %s2851_s1  ;;  %s426_s20 = sadd.s32 1, %s2724_s29 }
   0xd   : > { %s423_s21 = ssub.s32 %s2728_s30, %s2851_s1  ;;  %p436_p0 = scmp.ne.s32.totalorder %s2724_s29, %s2720_s28 }
   0xe   : > { %p424_p1 = scmp.eq.s32.totalorder %s423_s21, 0  ;;  %p437_p2 = scmp.eq.s32.totalorder %s2847_s0, 1 }
   0xf   : > { %p442_p3 = scmp.ne.s32.totalorder %s2720_s28, %s2716_s27  ;;  %p443_p4 = scmp.eq.s32.totalorder %s2437_s19, 1 }
  0x10   : > { %s2862_s22 = scalar_select %p424_p1, %s2724_s29, %s426_s20  }
  0x11   : > { %p2864_p5 = por %p437_p2, %p436_p0  ;;  %p2868_p6 = por %p443_p4, %p442_p3 }
  0x12   : > { %3557 = sst [smem:[#allocation9_spill]] %s2862_s22  ;;  %p2440_p7 = scmp.ge.s32.totalorder %s2728_s30, 1 }
  0x13   : > { %s3558_s2 = scalar_select %p2864_p5, 1, 0 }
  0x14   : > { %s3560_s23 = scalar_select %p2868_p6, 1, 0 }
  0x15   : > { %3559 = sst [smem:[#allocation10_spill]] %s3558_s2  ;;  %p525_p8 = scmp.lt.s32.totalorder %s2728_s30, 3 }
  0x16   : > { %3561 = sst [smem:[#allocation11_spill]] %s3560_s23 }
  0x17   : > { %p526_p9 = pnand %p2440_p7, %p525_p8 }
  0x18   : > { %s3562_s4 = sld [smem:[#allocation16_spill]] (!%p526_p9)  ;;  %s2884_s29 = sshll.u32 (!%p526_p9), %s2847_s0, 3 }
  0x19   : > { %529 = sbr.rel (%p526_p9) target bundleno = 2066 (0x812), region = 92  ;;  %s3563_s22 = sld [smem:[#allocation14_spill]] (!%p526_p9) }
  0x1a   : > { %p584_p10 = scmp.lt.s32.totalorder (!%p526_p9), %s2884_s29, 15  ;;  %s3564_s25 = sld [smem:[#allocation12_spill]] (!%p526_p9) }
  0x1b   : > { %s3565_s3 = sld [smem:[#allocation15_spill]] (!%p526_p9)  ;;  %p589_p11 = scmp.lt.s32.totalorder (!%p526_p9), %s2847_s0, 1 }
  0x1c   : > { %s3566_s23 = sld [smem:[#allocation13_spill]] (!%p526_p9)  ;;  %s2361_s30 = scalar_lea.hbm (!%p526_p9), %s3538_s18, %s2884_s29 }
  0x1d   : > { %s2365_s21 = sshll.u32 (!%p526_p9), %s2361_s30, 4  ;;  %s2366_s21 = int_to_ptr.hbm [resolvable:$true] %s2365_s21 }
  0x1e   : > { %v679_v0 = vld [vmem:[%s3562_s4 + $0x18] sm:$0xff]  ;;  %v678_v1 = vld [vmem:[%s3562_s4 + $0x10] sm:$0xff]  ;;  %v677_v3 = vld [vmem:[%s3562_s4 + $0x8] sm:$0xff]  ;;  %s585_s27 = scalar_select %p584_p10, %s2884_s29, 15  ;;  %vm610_vm0 = vcmask 261120   ;;  %vm1046_vm1 = vcmask 64512  }
  0x1f   : > { %v605_v2 = vld [vmem:[%s3563_s22 + $0x18] sm:$0xff]  ;;  %696 = vmatpush.msra.mxu1 %v679_v0  ;;  %v604_v4 = vld [vmem:[%s3563_s22 + $0x10] sm:$0xff]  ;;  %v676_v5 = vld [vmem:[%s3562_s4] sm:$0xff]  ;;  %s3577_s0 = smov (!%p589_p11, %s2847_s0), 1 }
  0x20   : > { %647 = vmatpush.msra.mxu0 %v605_v2  ;;  %v603_v6 = vld [vmem:[%s3563_s22 + $0x8] sm:$0xff]  ;;  %v602_v7 = vld [vmem:[%s3563_s22] sm:$0xff]  ;;  %s2443_s1 = sshll.u32 %s585_s27, 3  ;;  %s2444_s20 = sshll.u32 %s3577_s0, 3 }
  0x21   : > { %697 = vmatpush.msra.mxu1 %v678_v1  ;;  %s587_s26 = scalar_lea.vmem %s3564_s25, %s2443_s1  ;;  %v2569_v16 = vld [vmem:[%s3525_s5] ss:$0 sm:$0xff]  ;;  %s2680_s1 = sshra.s32 %s2366_s21, 4  ;;  %s2681_s1 = int_to_ptr.hbm [resolvable:$true] %s2680_s1 }
  0x22   : > { %648 = vmatpush.msra.mxu0 %v604_v4  ;;  %v2906_v8 = vld [vmem:[%s587_s26] sm:$0xff]  ;;  %v2912_v9 = vld [vmem:[%s587_s26 + $0x8] sm:$0xff]  ;;  %v2918_v10 = vld [vmem:[%s587_s26 + $0x10] sm:$0xff]  ;;  %s2981_s24 = scalar_lea.vmem %s3566_s23, %s2444_s20  ;;  %s2682_s23 = scalar_lea.hbm %s2681_s1, 8 }
  0x23   : > { %698 = vmatpush.msra.mxu1 %v677_v3  ;;  %v2924_v11 = vld [vmem:[%s587_s26 + $0x18] sm:$0xff]  ;;  %v2930_v12 = vld [vmem:[%s587_s26 + $0x20] sm:$0xff]  ;;  %v2936_v13 = vld [vmem:[%s587_s26 + $0x28] sm:$0xff]  ;;  %p2683_p12 = scmp.ne.s32.totalorder %s2681_s1, %s2682_s23  ;;  %p2687_p1 = scmp.lt.s32.totalorder %s2681_s1, %s3538_s18 }
  0x24   : > { %649 = vmatpush.msra.mxu0 %v603_v6  ;;  %v2942_v14 = vld [vmem:[%s587_s26 + $0x30] sm:$0xff]  ;;  %v2948_v15 = vld [vmem:[%s587_s26 + $0x38] sm:$0xff]  ;;  %v2570_v17 = vld [vmem:[%s3565_s3] ss:$0 sm:$0xff]  ;;  %s2686_s26 = scalar_lea.hbm %s3538_s18, 16 }
  0x25   : > { %699 = vmatpush.msra.mxu1 %v676_v5  ;;  %v601_v50 = vld [vmem:[%s2981_s24] sm:$0xff]  ;;  %p2684_p13 = pnand %p2683_p12, %p2864_p5  ;;  %p2688_p2 = scmp.lt.s32.totalorder %s2686_s26, %s2682_s23 }
  0x26   : > { %650 = vmatpush.msra.mxu0 %v602_v7  ;;  %2453 = vmatmul.msk.f32.vlgmr.msra.gmra.mxu1 %vm610_vm0, %v2906_v8  ;;  %v990_v51 = vsub.f32 1.0, %v601_v50 }
  0x27   : > { %2445 = vmatmul.msk.f32.vlgmr.msra.gmra.mxu0 %vm610_vm0, %v2906_v8  ;;  %p2685_p0 = pneg %p2684_p13  ;;  %p2689_p3 = por %p2688_p2, %p2687_p1 }
  0x28   : > { %v1006_v52 = vmul.f32 -1e+09, %v990_v51  ;;  %v992_v54 = vrot.slane %v990_v51, 1  ;;  %v993_v61 = vrot.slane %v990_v51, 2  ;;  %v994_v4 = vrot.slane %v990_v51, 3 }
  0x29   : > { %p2690_p4 = pnand %p2689_p3, %p2685_p0 }
  0x2a   : > { %v1022_v53 = vperm.slane %v1006_v52, 0  ;;  %v1007_v58 = vmul.f32 -1e+09, %v992_v54  ;;  %v1008_v1 = vmul.f32 -1e+09, %v993_v61 }
  0x2c   : > { %v1023_v60 = vperm.slane %v1007_v58, 0  ;;  %v1024_v3 = vperm.slane %v1008_v1, 0 }
  0x2e   : > { %2454 = vmatmul.msk.f32.gmra.mxu1 %vm610_vm0, %v2912_v9 }
  0x2f   : > { %2446 = vmatmul.msk.f32.gmra.mxu0 %vm610_vm0, %v2912_v9 }
  0x36   : > { %2455 = vmatmul.msk.f32.gmra.mxu1 %vm610_vm0, %v2918_v10 }
  0x37   : > { %2447 = vmatmul.msk.f32.gmra.mxu0 %vm610_vm0, %v2918_v10 }
  0x3e   : > { %2456 = vmatmul.msk.f32.gmra.mxu1 %vm610_vm0, %v2924_v11 }
  0x3f   : > { %2448 = vmatmul.msk.f32.gmra.mxu0 %vm610_vm0, %v2924_v11 }
  0x46   : > { %2457 = vmatmul.msk.f32.gmra.mxu1 %vm610_vm0, %v2930_v12 }
  0x47   : > { %2449 = vmatmul.msk.f32.gmra.mxu0 %vm610_vm0, %v2930_v12 }
  0x4e   : > { %2458 = vmatmul.msk.f32.gmra.mxu1 %vm610_vm0, %v2936_v13 }
  0x4f   : > { %2450 = vmatmul.msk.f32.gmra.mxu0 %vm610_vm0, %v2936_v13 }
  0x56   : > { %2459 = vmatmul.msk.f32.gmra.mxu1 %vm610_vm0, %v2942_v14 }
  0x57   : > { %2451 = vmatmul.msk.f32.gmra.mxu0 %vm610_vm0, %v2942_v14 }
  0x5e   : > { %2460 = vmatmul.msk.f32.gmra.mxu1 %vm610_vm0, %v2948_v15 }
  0x5f   : > { %2452 = vmatmul.msk.f32.gmra.mxu0 %vm610_vm0, %v2948_v15 }
  0xa3   : > { %v701_v18 = vpop.f32.mrf.mxu1 }
  0xa4   : > { %v652_v19 = vpop.f32.mrf.mxu0  ;;  %v702_v20 = vadd.f32 %v2569_v16, %v701_v18 }
  0xa5   : > { %v653_v21 = vadd.f32 %v2570_v17, %v652_v19  ;;  %v995_v19 = vrot.slane %v990_v51, 4 }
  0xa6   : > { %2469 = vmatpush.xpose.msk.msra.mxu3 %vm610_vm0, %v702_v20 }
  0xa9   : > { %2470 = vmatmul.msk.f32.vlgmr.msra.gmra.mxu3 %vm610_vm0, %v653_v21 }
  0xab   : > { %v704_v22 = vpop.f32.mrf.mxu1 }
  0xac   : > { %v655_v23 = vpop.f32.mrf.mxu0  ;;  %v705_v24 = vadd.f32 %v2569_v16, %v704_v22 }
  0xad   : > { %v656_v25 = vadd.f32 %v2570_v17, %v655_v23  ;;  %v1010_v23 = vmul.f32 -1e+09, %v995_v19 }
  0xae   : > { %2471 = vmatpush.xpose.msk.msrb.mxu3 %vm610_vm0, %v705_v24 }
  0xb1   : > { %2472 = vmatmul.msk.f32.vlgmr.msrb.gmra.mxu3 %vm610_vm0, %v656_v25  ;;  %v728_v25 = vld [vmem:[%s3526_s6 + $0x18] sm:$0xff] }
  0xb2   : > { %745 = vmatpush.msra.mxu2 %v728_v25 }
  0xb3   : > { %v707_v26 = vpop.f32.mrf.mxu1 }
  0xb4   : > { %v658_v27 = vpop.f32.mrf.mxu0  ;;  %v708_v28 = vadd.f32 %v2569_v16, %v707_v26  ;;  %v727_v26 = vld [vmem:[%s3526_s6 + $0x10] sm:$0xff] }
  0xb5   : > { %v659_v29 = vadd.f32 %v2570_v17, %v658_v27  ;;  %v1026_v27 = vperm.slane %v1010_v23, 0  ;;  %746 = vmatpush.msra.mxu2 %v727_v26 }
  0xb6   : > { %2473 = vmatpush.xpose.msk.msra.mxu3 %vm610_vm0, %v708_v28  ;;  %v996_v28 = vrot.slane %v990_v51, 5 }
  0xb9   : > { %2474 = vmatmul.msk.f32.vlgmr.msra.gmra.mxu3 %vm610_vm0, %v659_v29 }
  0xbb   : > { %v710_v30 = vpop.f32.mrf.mxu1 }
  0xbc   : > { %v661_v31 = vpop.f32.mrf.mxu0  ;;  %v711_v32 = vadd.f32 %v2569_v16, %v710_v30  ;;  %v726_v30 = vld [vmem:[%s3526_s6 + $0x8] sm:$0xff] }
  0xbd   : > { %v662_v33 = vadd.f32 %v2570_v17, %v661_v31  ;;  %747 = vmatpush.msra.mxu2 %v726_v30 }
  0xbe   : > { %2475 = vmatpush.xpose.msk.msrb.mxu3 %vm610_vm0, %v711_v32 }
  0xc1   : > { %2476 = vmatmul.msk.f32.vlgmr.msrb.gmra.mxu3 %vm610_vm0, %v662_v33  ;;  %v1011_v33 = vmul.f32 -1e+09, %v996_v28 }
  0xc3   : > { %v713_v34 = vpop.f32.mrf.mxu1 }
  0xc4   : > { %v664_v35 = vpop.f32.mrf.mxu0  ;;  %v714_v36 = vadd.f32 %v2569_v16, %v713_v34 }
  0xc5   : > { %v665_v37 = vadd.f32 %v2570_v17, %v664_v35  ;;  %v1027_v35 = vperm.slane %v1011_v33, 0 }
  0xc6   : > { %2477 = vmatpush.xpose.msk.msra.mxu3 %vm610_vm0, %v714_v36  ;;  %v997_v36 = vrot.slane %v990_v51, 6 }
  0xc9   : > { %2478 = vmatmul.msk.f32.vlgmr.msra.gmra.mxu3 %vm610_vm0, %v665_v37 }
  0xcb   : > { %v716_v38 = vpop.f32.mrf.mxu1 }
  0xcc   : > { %v667_v39 = vpop.f32.mrf.mxu0  ;;  %v717_v40 = vadd.f32 %v2569_v16, %v716_v38 }
  0xcd   : > { %v668_v41 = vadd.f32 %v2570_v17, %v667_v39 }
  0xce   : > { %2479 = vmatpush.xpose.msk.msrb.mxu3 %vm610_vm0, %v717_v40  ;;  %v1012_v40 = vmul.f32 -1e+09, %v997_v36 }
  0xd1   : > { %2480 = vmatmul.msk.f32.vlgmr.msrb.gmra.mxu3 %vm610_vm0, %v668_v41 }
  0xd3   : > { %v719_v42 = vpop.f32.mrf.mxu1 }
  0xd4   : > { %v670_v43 = vpop.f32.mrf.mxu0  ;;  %v720_v44 = vadd.f32 %v2569_v16, %v719_v42  ;;  %v1028_v42 = vperm.slane %v1012_v40, 0 }
  0xd5   : > { %v671_v45 = vadd.f32 %v2570_v17, %v670_v43  ;;  %v998_v43 = vrot.slane %v990_v51, 7 }
  0xd6   : > { %2481 = vmatpush.xpose.msk.msra.mxu3 %vm610_vm0, %v720_v44 }
  0xd9   : > { %2482 = vmatmul.msk.f32.vlgmr.msra.gmra.mxu3 %vm610_vm0, %v671_v45 }
  0xdb   : > { %v722_v46 = vpop.f32.mrf.mxu1 }
  0xdc   : > { %v673_v47 = vpop.f32.mrf.mxu0  ;;  %v723_v48 = vadd.f32 %v2569_v16, %v722_v46  ;;  %v1009_v16 = vmul.f32 -1e+09, %v994_v4 }
  0xdd   : > { %v674_v49 = vadd.f32 %v2570_v17, %v673_v47  ;;  %v1013_v47 = vmul.f32 -1e+09, %v998_v43 }
  0xde   : > { %2483 = vmatpush.xpose.msk.msrb.mxu3 %vm610_vm0, %v723_v48  ;;  %v1025_v18 = vperm.slane %v1009_v16, 0 }
  0xe1   : > { %2484 = vmatmul.msk.f32.vlgmr.msrb.gmra.mxu3 %vm610_vm0, %v674_v49  ;;  %v1029_v49 = vperm.slane %v1013_v47, 0 }
 0x12c   : > { %v797_v55 = vpop.f32.mrf.mxu3 }
 0x12d   : > { %v982_v56 = vmul.f32 0.17677669, %v797_v55  ;;  %v725_v55 = vld [vmem:[%s3526_s6] sm:$0xff] }
 0x12e   : > { %748 = vmatpush.msra.mxu2 %v725_v55 }
 0x12f   : > { %v2984_v57 = vadd.f32 %v1022_v53, %v982_v56  ;;  %2461 = vmatmul.msk.f32.vlgmr.msra.gmra.mxu2 %vm610_vm0, %v2906_v8 }
 0x131   : > { %v1047_v59 = vsel %vm1046_vm1, %v2984_v57, -inf }
 0x132   : > { %1048 = vmax.xlane.f32.xlu0 %v1047_v59 }
 0x134   : > { %v823_v62 = vpop.f32.mrf.mxu3 }
 0x135   : > { %v983_v63 = vmul.f32 0.17677669, %v823_v62 }
 0x137   : > { %v2988_v0 = vadd.f32 %v1023_v60, %v983_v63  ;;  %2462 = vmatmul.msk.f32.gmra.mxu2 %vm610_vm0, %v2912_v9 }
 0x139   : > { %v1050_v2 = vsel %vm1046_vm1, %v2988_v0, -inf }
 0x13a   : > { %1051 = vmax.xlane.f32.xlu0 %v1050_v2 }
 0x13c   : > { %v849_v5 = vpop.f32.mrf.mxu3 }
 0x13d   : > { %v984_v6 = vmul.f32 0.17677669, %v849_v5 }
 0x13f   : > { %v2992_v7 = vadd.f32 %v1024_v3, %v984_v6  ;;  %2463 = vmatmul.msk.f32.gmra.mxu2 %vm610_vm0, %v2918_v10 }
 0x141   : > { %v1053_v17 = vsel %vm1046_vm1, %v2992_v7, -inf }
 0x142   : > { %1054 = vmax.xlane.f32.xlu1 %v1053_v17 }
 0x144   : > { %v875_v20 = vpop.f32.mrf.mxu3 }
 0x145   : > { %v985_v21 = vmul.f32 0.17677669, %v875_v20 }
 0x147   : > { %v2996_v22 = vadd.f32 %v1025_v18, %v985_v21  ;;  %2464 = vmatmul.msk.f32.gmra.mxu2 %vm610_vm0, %v2924_v11 }
 0x149   : > { %v1056_v24 = vsel %vm1046_vm1, %v2996_v22, -inf }
 0x14a   : > { %1057 = vmax.xlane.f32.xlu1 %v1056_v24 }
 0x14c   : > { %v901_v29 = vpop.f32.mrf.mxu3 }
 0x14d   : > { %v986_v31 = vmul.f32 0.17677669, %v901_v29 }
 0x14f   : > { %v3009_v32 = vadd.f32 %v1026_v27, %v986_v31  ;;  %2465 = vmatmul.msk.f32.gmra.mxu2 %vm610_vm0, %v2930_v12 }
 0x151   : > { %v1059_v34 = vsel %vm1046_vm1, %v3009_v32, -inf }
 0x152   : > { %1060 = vmax.xlane.f32.xlu2 %v1059_v34 }
 0x154   : > { %v927_v37 = vpop.f32.mrf.mxu3 }
 0x155   : > { %v987_v38 = vmul.f32 0.17677669, %v927_v37 }
 0x157   : > { %v3013_v39 = vadd.f32 %v1027_v35, %v987_v38  ;;  %2466 = vmatmul.msk.f32.gmra.mxu2 %vm610_vm0, %v2936_v13 }
 0x159   : > { %v1062_v41 = vsel %vm1046_vm1, %v3013_v39, -inf }
 0x15a   : > { %1063 = vmax.xlane.f32.xlu2 %v1062_v41 }
 0x15c   : > { %v953_v44 = vpop.f32.mrf.mxu3 }
 0x15d   : > { %v988_v45 = vmul.f32 0.17677669, %v953_v44 }
 0x15f   : > { %v1044_v46 = vadd.f32 %v1028_v42, %v988_v45  ;;  %2467 = vmatmul.msk.f32.gmra.mxu2 %vm610_vm0, %v2942_v14 }
 0x161   : > { %v1065_v48 = vsel %vm1046_vm1, %v1044_v46, -inf }
 0x162   : > { %1066 = vmax.xlane.f32.xlu1 %v1065_v48 }
 0x164   : > { %v979_v50 = vpop.f32.mrf.mxu3 }
 0x165   : > { %v989_v52 = vmul.f32 0.17677669, %v979_v50 }
 0x167   : > { %v1045_v53 = vadd.f32 %v1029_v49, %v989_v52  ;;  %2468 = vmatmul.msk.f32.gmra.mxu2 %vm610_vm0, %v2948_v15 }
 0x169   : > { %v1068_v54 = vsel %vm1046_vm1, %v1045_v53, -inf }
 0x16a   : > { %1069 = vmax.xlane.f32.xlu2 %v1068_v54 }
 0x1a5   : > { %v1049_v51 = vpop.xlane.xlu0 %1048 }
 0x1a6   : > { %v1071_v56 = vsub.f32 %v2984_v57, %v1049_v51 }
 0x1a8   : > { %v1079_v58 = vmul.f32 1.442695, %v1071_v56 }
 0x1aa   : > { %2579 = vpow2.f32 %v1079_v58 }
 0x1ad   : > { %v1052_v59 = vpop.xlane.xlu0 %1051 }
 0x1ae   : > { %v1072_v60 = vsub.f32 %v2988_v0, %v1052_v59 }
 0x1b0   : > { %v3034_v61 = vpop.eup %2579  ;;  %v1081_v62 = vmul.f32 1.442695, %v1072_v60 }
 0x1b1   : > { %v1095_v63 = vsel %vm1046_vm1, %v3034_v61, 0.0 }
 0x1b2   : > { %2581 = vpow2.f32 %v1081_v62  ;;  %1096 = vadd.xlane.f32.xlu0 %v1095_v63  ;;  %v750_v40 = vpop.f32.mrf.mxu2 }
 0x1b5   : > { %v1055_v57 = vpop.xlane.xlu1 %1054 }
 0x1b6   : > { %v1073_v1 = vsub.f32 %v2992_v7, %v1055_v57 }
 0x1b8   : > { %v3041_v2 = vpop.eup %2581  ;;  %v1083_v3 = vmul.f32 1.442695, %v1073_v1 }
 0x1b9   : > { %v1098_v0 = vsel %vm1046_vm1, %v3041_v2, 0.0 }
 0x1ba   : > { %2583 = vpow2.f32 %v1083_v3  ;;  %1099 = vadd.xlane.f32.xlu0 %v1098_v0  ;;  %v753_v42 = vpop.f32.mrf.mxu2 }
 0x1bd   : > { %v1058_v4 = vpop.xlane.xlu1 %1057 }
 0x1be   : > { %v1074_v5 = vsub.f32 %v2996_v22, %v1058_v4 }
 0x1c0   : > { %v3048_v6 = vpop.eup %2583  ;;  %v1085_v16 = vmul.f32 1.442695, %v1074_v5  ;;  %v1322_v5 = vld [vmem:[%s3528_s8 + $0x18] sm:$0xff] }
 0x1c1   : > { %v1101_v7 = vsel %vm1046_vm1, %v3048_v6, 0.0 }
 0x1c2   : > { %2585 = vpow2.f32 %v1085_v16  ;;  %1102 = vadd.xlane.f32.xlu1 %v1101_v7  ;;  %v756_v44 = vpop.f32.mrf.mxu2  ;;  %v1320_v16 = vld [vmem:[%s3528_s8 + $0x8] sm:$0xff] }
 0x1c5   : > { %v1061_v17 = vpop.xlane.xlu2 %1060 }
 0x1c6   : > { %v1075_v18 = vsub.f32 %v3009_v32, %v1061_v17 }
 0x1c8   : > { %v3055_v19 = vpop.eup %2585  ;;  %v1087_v20 = vmul.f32 1.442695, %v1075_v18 }
 0x1c9   : > { %v1104_v21 = vsel %vm1046_vm1, %v3055_v19, 0.0 }
 0x1ca   : > { %2587 = vpow2.f32 %v1087_v20  ;;  %1105 = vadd.xlane.f32.xlu2 %v1104_v21 }
 0x1cd   : > { %v1064_v22 = vpop.xlane.xlu2 %1063 }
 0x1ce   : > { %v1076_v23 = vsub.f32 %v3013_v39, %v1064_v22  ;;  %v2571_v39 = vld [vmem:[%s3527_s7] ss:$0 sm:$0xff] }
 0x1cf   : > { %v751_v41 = vadd.f32 %v2571_v39, %v750_v40  ;;  %v754_v43 = vadd.f32 %v2571_v39, %v753_v42  ;;  %v757_v45 = vadd.f32 %v2571_v39, %v756_v44 }
 0x1d0   : > { %v3060_v24 = vpop.eup %2587  ;;  %v1089_v25 = vmul.f32 1.442695, %v1076_v23 }
 0x1d1   : > { %v1107_v26 = vsel %vm1046_vm1, %v3060_v24, 0.0  ;;  %1153 = vmatpush.msra.mxu3 %v751_v41  ;;  %1176 = vmatpush.msrb.mxu0 %v754_v43 }
 0x1d2   : > { %2589 = vpow2.f32 %v1089_v25  ;;  %1108 = vadd.xlane.f32.xlu0 %v1107_v26 }
 0x1d3   : > { %1199 = vmatpush.msrb.mxu3 %v757_v45 }
 0x1d5   : > { %v1067_v27 = vpop.xlane.xlu1 %1066 }
 0x1d6   : > { %v1077_v28 = vsub.f32 %v1044_v46, %v1067_v27  ;;  %v759_v46 = vpop.f32.mrf.mxu2  ;;  %v1319_v27 = vld [vmem:[%s3528_s8] sm:$0xff] }
 0x1d7   : > { %v760_v47 = vadd.f32 %v2571_v39, %v759_v46 }
 0x1d8   : > { %v3064_v29 = vpop.eup %2589  ;;  %v1091_v30 = vmul.f32 1.442695, %v1077_v28 }
 0x1d9   : > { %v1110_v31 = vsel %vm1046_vm1, %v3064_v29, 0.0  ;;  %1222 = vmatpush.msrb.mxu2 %v760_v47 }
 0x1da   : > { %2591 = vpow2.f32 %v1091_v30  ;;  %1111 = vadd.xlane.f32.xlu1 %v1110_v31 }
 0x1dd   : > { %v1070_v32 = vpop.xlane.xlu2 %1069 }
 0x1de   : > { %v1078_v33 = vsub.f32 %v1045_v53, %v1070_v32  ;;  %v762_v49 = vpop.f32.mrf.mxu2 }
 0x1df   : > { %v763_v52 = vadd.f32 %v2571_v39, %v762_v49 }
 0x1e0   : > { %v3068_v34 = vpop.eup %2591  ;;  %v1093_v35 = vmul.f32 1.442695, %v1078_v33 }
 0x1e1   : > { %v1113_v36 = vsel %vm1046_vm1, %v3068_v34, 0.0 }
 0x1e2   : > { %2593 = vpow2.f32 %v1093_v35  ;;  %1114 = vadd.xlane.f32.xlu2 %v1113_v36  ;;  %v2572_v36 = vld [vmem:[%s3529_s9] ss:$0 sm:$0xff] }
 0x1e6   : > { %v765_v55 = vpop.f32.mrf.mxu2 }
 0x1e7   : > { %v766_v56 = vadd.f32 %v2571_v39, %v765_v55 }
 0x1e8   : > { %v3072_v37 = vpop.eup %2593 }
 0x1e9   : > { %v1116_v38 = vsel %vm1046_vm1, %v3072_v37, 0.0  ;;  %1268 = vmatpush.msra.mxu0 %v766_v56 }
 0x1ea   : > { %1117 = vadd.xlane.f32.xlu0 %v1116_v38 }
 0x1ee   : > { %v768_v60 = vpop.f32.mrf.mxu2 }
 0x1ef   : > { %v769_v63 = vadd.f32 %v2571_v39, %v768_v60 }
 0x1f1   : > { %1291 = vmatpush.msrb.mxu1 %v769_v63  ;;  %v2730_v63 = vmov 32.0  }
 0x1f6   : > { %v771_v1 = vpop.f32.mrf.mxu2 }
 0x1f7   : > { %v772_v0 = vadd.f32 %v2571_v39, %v771_v1 }
 0x1f9   : > { %1314 = vmatpush.msra.mxu2 %v772_v0 }
 0x225   : > { %v1097_v48 = vpop.xlane.xlu0 %1096 }
 0x226   : > { %2595 = vrcp.f32 %v1097_v48 }
 0x22c   : > { %v2596_v50 = vpop.eup %2595 }
 0x22d   : > { %v1127_v53 = vmul.f32 %v2596_v50, %v3034_v61  ;;  %v1100_v54 = vpop.xlane.xlu0 %1099 }
 0x22e   : > { %2597 = vrcp.f32 %v1100_v54 }
 0x22f   : > { %2485 = vmatmul.msk.f32.vlgmr.msra.gmra.mxu3 %vm1046_vm1, %v1127_v53 }
 0x230   : > { %1245 = vmatpush.msra.mxu3 %v763_v52 }
 0x234   : > { %v2598_v51 = vpop.eup %2597 }
 0x235   : > { %v1103_v58 = vpop.xlane.xlu1 %1102  ;;  %v1128_v59 = vmul.f32 %v2598_v51, %v3041_v2 }
 0x236   : > { %2599 = vrcp.f32 %v1103_v58 }
 0x237   : > { %2486 = vmatmul.msk.f32.vlgmr.msrb.gmra.mxu0 %vm1046_vm1, %v1128_v59 }
 0x23c   : > { %v2600_v62 = vpop.eup %2599 }
 0x23d   : > { %v1129_v61 = vmul.f32 %v2600_v62, %v3048_v6  ;;  %v1106_v57 = vpop.xlane.xlu2 %1105  ;;  %v1321_v6 = vld [vmem:[%s3528_s8 + $0x10] sm:$0xff] }
 0x23e   : > { %2601 = vrcp.f32 %v1106_v57 }
 0x23f   : > { %2487 = vmatmul.msk.f32.vlgmr.msrb.gmra.mxu3 %vm1046_vm1, %v1129_v61 }
 0x240   : > { %1363 = vmatpush.msrb.mxu3 %v1322_v5 }
 0x242   : > { %1364 = vmatpush.msrb.mxu3 %v1321_v6 }
 0x244   : > { %v2602_v3 = vpop.eup %2601  ;;  %1365 = vmatpush.msrb.mxu3 %v1320_v16 }
 0x245   : > { %v1109_v4 = vpop.xlane.xlu0 %1108  ;;  %v1130_v2 = vmul.f32 %v2602_v3, %v3055_v19 }
 0x246   : > { %2603 = vrcp.f32 %v1109_v4  ;;  %1366 = vmatpush.msrb.mxu3 %v1319_v27 }
 0x247   : > { %2488 = vmatmul.msk.f32.vlgmr.msrb.gmra.mxu2 %vm1046_vm1, %v1130_v2 }
 0x24c   : > { %v2604_v7 = vpop.eup %2603 }
 0x24d   : > { %v1131_v17 = vmul.f32 %v2604_v7, %v3060_v24  ;;  %v1112_v18 = vpop.xlane.xlu1 %1111 }
 0x24e   : > { %2605 = vrcp.f32 %v1112_v18 }
 0x24f   : > { %2489 = vmatmul.msk.f32.vlgmr.msra.gmra.mxu3 %vm1046_vm1, %v1131_v17 }
 0x254   : > { %v2606_v19 = vpop.eup %2605 }
 0x255   : > { %v1132_v20 = vmul.f32 %v2606_v19, %v3064_v29  ;;  %v1115_v21 = vpop.xlane.xlu2 %1114 }
 0x256   : > { %2607 = vrcp.f32 %v1115_v21 }
 0x257   : > { %2490 = vmatmul.msk.f32.vlgmr.msra.gmra.mxu0 %vm1046_vm1, %v1132_v20 }
 0x25c   : > { %v2608_v22 = vpop.eup %2607 }
 0x25d   : > { %v1118_v23 = vpop.xlane.xlu0 %1117  ;;  %v1133_v25 = vmul.f32 %v2608_v22, %v3068_v34 }
 0x25e   : > { %2609 = vrcp.f32 %v1118_v23 }
 0x25f   : > { %2491 = vmatmul.msk.f32.vlgmr.msrb.gmra.mxu1 %vm1046_vm1, %v1133_v25  ;;  %2611 = vrcp.f32 %v2730_v63 }
 0x264   : > { %v2610_v26 = vpop.eup %2609 }
 0x265   : > { %v1134_v24 = vmul.f32 %v2610_v26, %v3072_v37 }
 0x267   : > { %2492 = vmatmul.msk.f32.vlgmr.msra.gmra.mxu2 %vm1046_vm1, %v1134_v24 }
 0x2b2   : > { %v1155_v28 = vpop.f32.mrf.mxu3 }
 0x2b3   : > { %2493 = vmatmul.msk.f32.vlgmr.msrb.gmra.mxu3 %vm610_vm0, %v1155_v28 }
 0x2b4   : > { %v1178_v29 = vpop.f32.mrf.mxu0 }
 0x2bb   : > { %2494 = vmatmul.msk.f32.gmra.mxu3 %vm610_vm0, %v1178_v29 }
 0x2c2   : > { %v1201_v30 = vpop.f32.mrf.mxu3 }
 0x2c3   : > { %2495 = vmatmul.msk.f32.gmra.mxu3 %vm610_vm0, %v1201_v30 }
 0x2ca   : > { %v1224_v31 = vpop.f32.mrf.mxu2 }
 0x2cb   : > { %2496 = vmatmul.msk.f32.gmra.mxu3 %vm610_vm0, %v1224_v31 }
 0x2d2   : > { %v1247_v32 = vpop.f32.mrf.mxu3 }
 0x2d3   : > { %2497 = vmatmul.msk.f32.gmra.mxu3 %vm610_vm0, %v1247_v32 }
 0x2d4   : > { %v1270_v33 = vpop.f32.mrf.mxu0 }
 0x2db   : > { %2498 = vmatmul.msk.f32.gmra.mxu3 %vm610_vm0, %v1270_v33 }
 0x2dc   : > { %v1293_v34 = vpop.f32.mrf.mxu1 }
 0x2e3   : > { %2499 = vmatmul.msk.f32.gmra.mxu3 %vm610_vm0, %v1293_v34 }
 0x2ea   : > { %v1316_v35 = vpop.f32.mrf.mxu2 }
 0x2eb   : > { %2500 = vmatmul.msk.f32.gmra.mxu3 %vm610_vm0, %v1316_v35 }
 0x336   : > { %v1368_v37 = vpop.f32.mrf.mxu3 }
 0x337   : > { %v1369_v38 = vadd.f32 %v2572_v36, %v1368_v37 }
 0x339   : > { %v1392_v39 = vadd.f32 %v1369_v38, %v2906_v8 }
 0x33b   : > { %v1402_v40 = vsel %vm610_vm0, %v1392_v39, 0.0 }
 0x33c   : > { %1403 = vadd.xlane.f32.xlu1 %v1402_v40 }
 0x33e   : > { %v1371_v41 = vpop.f32.mrf.mxu3 }
 0x33f   : > { %v1372_v42 = vadd.f32 %v2572_v36, %v1371_v41 }
 0x341   : > { %v1393_v43 = vadd.f32 %v1372_v42, %v2912_v9 }
 0x343   : > { %v1405_v44 = vsel %vm610_vm0, %v1393_v43, 0.0 }
 0x344   : > { %1406 = vadd.xlane.f32.xlu2 %v1405_v44 }
 0x346   : > { %v1374_v45 = vpop.f32.mrf.mxu3 }
 0x347   : > { %v1375_v46 = vadd.f32 %v2572_v36, %v1374_v45 }
 0x349   : > { %v1394_v47 = vadd.f32 %v1375_v46, %v2918_v10 }
 0x34b   : > { %v1408_v48 = vsel %vm610_vm0, %v1394_v47, 0.0 }
 0x34c   : > { %1409 = vadd.xlane.f32.xlu0 %v1408_v48  ;;  %v1609_v48 = vld [vmem:[%s3532_s12 + $0x10] sm:$0xff] }
 0x34e   : > { %v1377_v49 = vpop.f32.mrf.mxu3 }
 0x34f   : > { %v1378_v50 = vadd.f32 %v2572_v36, %v1377_v49  ;;  %v1608_v49 = vld [vmem:[%s3532_s12 + $0x8] sm:$0xff] }
 0x351   : > { %v1395_v8 = vadd.f32 %v1378_v50, %v2924_v11  ;;  %v1607_v50 = vld [vmem:[%s3532_s12] sm:$0xff] }
 0x353   : > { %v1411_v52 = vsel %vm610_vm0, %v1395_v8, 0.0 }
 0x354   : > { %1412 = vadd.xlane.f32.xlu1 %v1411_v52 }
 0x356   : > { %v1380_v53 = vpop.f32.mrf.mxu3 }
 0x357   : > { %v1381_v54 = vadd.f32 %v2572_v36, %v1380_v53 }
 0x359   : > { %v1396_v9 = vadd.f32 %v1381_v54, %v2930_v12  ;;  %v2612_v12 = vpop.eup %2611 }
 0x35a   : > { %v1427_v61 = vmul.f32 32.0, %v2612_v12  ;;  %vm1431_vm2 = vweird.f32 %v2612_v12 }
 0x35b   : > { %v1414_v55 = vsel %vm610_vm0, %v1396_v9, 0.0 }
 0x35c   : > { %1415 = vadd.xlane.f32.xlu2 %v1414_v55  ;;  %v1428_v57 = vsub.f32 1.0, %v1427_v61 }
 0x35e   : > { %v1383_v51 = vpop.f32.mrf.mxu3  ;;  %v1429_v1 = vmul.f32 %v2612_v12, %v1428_v57 }
 0x35f   : > { %v1384_v56 = vadd.f32 %v2572_v36, %v1383_v51 }
 0x360   : > { %v1430_v3 = vadd.f32 %v2612_v12, %v1429_v1 }
 0x361   : > { %v1397_v10 = vadd.f32 %v1384_v56, %v2936_v13 }
 0x362   : > { %v3132_v0 = vsel %vm1431_vm2, %v2612_v12, %v1430_v3 }
 0x363   : > { %v1417_v58 = vsel %vm610_vm0, %v1397_v10, 0.0 }
 0x364   : > { %1418 = vadd.xlane.f32.xlu0 %v1417_v58 }
 0x366   : > { %v1386_v59 = vpop.f32.mrf.mxu3 }
 0x367   : > { %v1387_v60 = vadd.f32 %v2572_v36, %v1386_v59 }
 0x369   : > { %v1398_v11 = vadd.f32 %v1387_v60, %v2942_v14 }
 0x36b   : > { %v1420_v62 = vsel %vm610_vm0, %v1398_v11, 0.0 }
 0x36c   : > { %1421 = vadd.xlane.f32.xlu2 %v1420_v62 }
 0x36e   : > { %v1389_v5 = vpop.f32.mrf.mxu3 }
 0x36f   : > { %v1390_v6 = vadd.f32 %v2572_v36, %v1389_v5  ;;  %v3202_v5 = vld [vmem:[%s3530_s10] ss:$0 sm:$0xff] }
 0x371   : > { %v1399_v19 = vadd.f32 %v1390_v6, %v2948_v15 }
 0x373   : > { %v1423_v21 = vsel %vm610_vm0, %v1399_v19, 0.0 }
 0x3af   : > { %v1404_v13 = vpop.xlane.xlu1 %1403 }
 0x3b0   : > { %v1433_v4 = vmul.f32 %v3132_v0, %v1404_v13 }
 0x3b2   : > { %v3135_v2 = vsub.f32 %v1392_v39, %v1433_v4 }
 0x3b4   : > { %v1449_v14 = vmul.f32 %v3135_v2, %v3135_v2 }
 0x3b6   : > { %v1457_v16 = vsel %vm610_vm0, %v1449_v14, 0.0 }
 0x3b7   : > { %1458 = vadd.xlane.f32.xlu1 %v1457_v16  ;;  %v1407_v7 = vpop.xlane.xlu2 %1406 }
 0x3b8   : > { %v1434_v17 = vmul.f32 %v3132_v0, %v1407_v7  ;;  %v3208_v7 = vld [vmem:[%s3531_s11] ss:$0 sm:$0xff] }
 0x3ba   : > { %v3141_v18 = vsub.f32 %v1393_v43, %v1434_v17 }
 0x3bc   : > { %v1450_v20 = vmul.f32 %v3141_v18, %v3141_v18 }
 0x3be   : > { %v1460_v22 = vsel %vm610_vm0, %v1450_v20, 0.0 }
 0x3bf   : > { %v1410_v23 = vpop.xlane.xlu0 %1409  ;;  %1424 = vadd.xlane.f32.xlu1 %v1423_v21  ;;  %1461 = vadd.xlane.f32.xlu0 %v1460_v22 }
 0x3c0   : > { %v1435_v25 = vmul.f32 %v3132_v0, %v1410_v23 }
 0x3c2   : > { %v3149_v26 = vsub.f32 %v1394_v47, %v1435_v25  ;;  %v1610_v47 = vld [vmem:[%s3532_s12 + $0x18] sm:$0xff] }
 0x3c3   : > { %1651 = vmatpush.msrb.mxu0 %v1610_v47 }
 0x3c4   : > { %v1451_v24 = vmul.f32 %v3149_v26, %v3149_v26 }
 0x3c5   : > { %1652 = vmatpush.msrb.mxu0 %v1609_v48 }
 0x3c6   : > { %v1463_v27 = vsel %vm610_vm0, %v1451_v24, 0.0 }
 0x3c7   : > { %v1413_v15 = vpop.xlane.xlu1 %1412  ;;  %1464 = vadd.xlane.f32.xlu2 %v1463_v27  ;;  %1653 = vmatpush.msrb.mxu0 %v1608_v49 }
 0x3c8   : > { %v1436_v28 = vmul.f32 %v3132_v0, %v1413_v15 }
 0x3c9   : > { %1654 = vmatpush.msrb.mxu0 %v1607_v50 }
 0x3ca   : > { %v3155_v29 = vsub.f32 %v1395_v8, %v1436_v28 }
 0x3cc   : > { %v1452_v30 = vmul.f32 %v3155_v29, %v3155_v29 }
 0x3ce   : > { %v1466_v31 = vsel %vm610_vm0, %v1452_v30, 0.0 }
 0x3cf   : > { %1467 = vadd.xlane.f32.xlu0 %v1466_v31  ;;  %v1416_v32 = vpop.xlane.xlu2 %1415 }
 0x3d0   : > { %v1437_v33 = vmul.f32 %v3132_v0, %v1416_v32 }
 0x3d2   : > { %v3161_v34 = vsub.f32 %v1396_v9, %v1437_v33 }
 0x3d4   : > { %v1453_v35 = vmul.f32 %v3161_v34, %v3161_v34 }
 0x3d6   : > { %v1469_v36 = vsel %vm610_vm0, %v1453_v35, 0.0 }
 0x3d7   : > { %v1419_v37 = vpop.xlane.xlu0 %1418  ;;  %1470 = vadd.xlane.f32.xlu1 %v1469_v36 }
 0x3d8   : > { %v1438_v38 = vmul.f32 %v3132_v0, %v1419_v37 }
 0x3da   : > { %v3167_v39 = vsub.f32 %v1397_v10, %v1438_v38 }
 0x3dc   : > { %v1454_v40 = vmul.f32 %v3167_v39, %v3167_v39 }
 0x3de   : > { %v1472_v41 = vsel %vm610_vm0, %v1454_v40, 0.0 }
 0x3df   : > { %1473 = vadd.xlane.f32.xlu2 %v1472_v41  ;;  %v1422_v42 = vpop.xlane.xlu2 %1421 }
 0x3e0   : > { %v1439_v43 = vmul.f32 %v3132_v0, %v1422_v42 }
 0x3e2   : > { %v3173_v44 = vsub.f32 %v1398_v11, %v1439_v43 }
 0x3e4   : > { %v1455_v45 = vmul.f32 %v3173_v44, %v3173_v44 }
 0x3e6   : > { %v1475_v46 = vsel %vm610_vm0, %v1455_v45, 0.0 }
 0x3e7   : > { %1476 = vadd.xlane.f32.xlu0 %v1475_v46 }
 0x42a   : > { %v1459_v8 = vpop.xlane.xlu1 %1458 }
 0x42b   : > { %v1481_v52 = vmul.f32 %v1459_v8, %v3132_v0 }
 0x42d   : > { %v1489_v53 = vadd.f32 1e-05, %v1481_v52 }
 0x42f   : > { %2613 = vrsqrt.f32 %v1489_v53  ;;  %vm1503_vm4 = vweird.f32 %v1489_v53 }
 0x432   : > { %v1425_v54 = vpop.xlane.xlu1 %1424  ;;  %v1462_v9 = vpop.xlane.xlu0 %1461 }
 0x433   : > { %v1440_v55 = vmul.f32 %v3132_v0, %v1425_v54  ;;  %v1482_v51 = vmul.f32 %v1462_v9, %v3132_v0 }
 0x435   : > { %v2614_v56 = vpop.eup %2613  ;;  %v3193_v10 = vsub.f32 %v1399_v19, %v1440_v55  ;;  %v1490_v58 = vadd.f32 1e-05, %v1482_v51 }
 0x436   : > { %v1498_v59 = vmul.f32 %v2614_v56, %v1489_v53  ;;  %vm1504_vm3 = vweird.f32 %v2614_v56 }
 0x437   : > { %2615 = vrsqrt.f32 %v1490_v58  ;;  %v1456_v60 = vmul.f32 %v3193_v10, %v3193_v10  ;;  %vm1505_vm5 = vmor %vm1503_vm4, %vm1504_vm3  ;;  %vm1513_vm7 = vweird.f32 %v1490_v58 }
 0x438   : > { %v1499_v11 = vmul.f32 %v2614_v56, %v1498_v59 }
 0x439   : > { %v1478_v62 = vsel %vm610_vm0, %v1456_v60, 0.0 }
 0x43a   : > { %v1500_v63 = vmul.f32 0.5, %v1499_v11  ;;  %1479 = vadd.xlane.f32.xlu1 %v1478_v62  ;;  %v1465_v12 = vpop.xlane.xlu2 %1464 }
 0x43b   : > { %v1483_v61 = vmul.f32 %v1465_v12, %v3132_v0 }
 0x43c   : > { %v1501_v57 = vsub.f32 1.5, %v1500_v63 }
 0x43d   : > { %v2616_v1 = vpop.eup %2615  ;;  %v1491_v3 = vadd.f32 1e-05, %v1483_v61 }
 0x43e   : > { %v1502_v13 = vmul.f32 %v2614_v56, %v1501_v57  ;;  %v1508_v4 = vmul.f32 %v2616_v1, %v1490_v58  ;;  %vm1514_vm6 = vweird.f32 %v2616_v1 }
 0x43f   : > { %2617 = vrsqrt.f32 %v1491_v3  ;;  %vm1515_vm8 = vmor %vm1513_vm7, %vm1514_vm6  ;;  %vm1523_vm10 = vweird.f32 %v1491_v3 }
 0x440   : > { %v1506_v14 = vsel %vm1505_vm5, %v2614_v56, %v1502_v13  ;;  %v1509_v6 = vmul.f32 %v2616_v1, %v1508_v4 }
 0x441   : > { %v1577_v16 = vmul.f32 %v1506_v14, %v3135_v2 }
 0x442   : > { %v1510_v17 = vmul.f32 0.5, %v1509_v6  ;;  %v1468_v19 = vpop.xlane.xlu0 %1467 }
 0x443   : > { %v1588_v20 = vmul.f32 %v3202_v5, %v1577_v16  ;;  %v1484_v21 = vmul.f32 %v1468_v19, %v3132_v0 }
 0x444   : > { %v1511_v22 = vsub.f32 1.5, %v1510_v17 }
 0x445   : > { %v2618_v23 = vpop.eup %2617  ;;  %v1492_v25 = vadd.f32 1e-05, %v1484_v21  ;;  %v3213_v24 = vadd.f32 %v3208_v7, %v1588_v20 }
 0x446   : > { %v1512_v27 = vmul.f32 %v2616_v1, %v1511_v22  ;;  %v1518_v2 = vmul.f32 %v2618_v23, %v1491_v3  ;;  %vm1524_vm9 = vweird.f32 %v2618_v23 }
 0x447   : > { %2619 = vrsqrt.f32 %v1492_v25  ;;  %2501 = vmatmul.msk.f32.vlgmr.msrb.gmra.mxu0 %vm610_vm0, %v3213_v24  ;;  %vm1525_vm11 = vmor %vm1523_vm10, %vm1524_vm9  ;;  %vm1533_vm13 = vweird.f32 %v1492_v25 }
 0x448   : > { %v1516_v15 = vsel %vm1515_vm8, %v2616_v1, %v1512_v27  ;;  %v1519_v28 = vmul.f32 %v2618_v23, %v1518_v2 }
 0x449   : > { %v1578_v30 = vmul.f32 %v1516_v15, %v3141_v18 }
 0x44a   : > { %v1520_v31 = vmul.f32 0.5, %v1519_v28  ;;  %v1471_v32 = vpop.xlane.xlu1 %1470 }
 0x44b   : > { %v1485_v33 = vmul.f32 %v1471_v32, %v3132_v0  ;;  %v1589_v35 = vmul.f32 %v3202_v5, %v1578_v30 }
 0x44c   : > { %v1521_v36 = vsub.f32 1.5, %v1520_v31  ;;  %v1759_v31 = vld [vmem:[%s3534_s14 + $0x38] sm:$0xff] }
 0x44d   : > { %v2620_v37 = vpop.eup %2619  ;;  %v1493_v38 = vadd.f32 1e-05, %v1485_v33  ;;  %v3221_v40 = vadd.f32 %v3208_v7, %v1589_v35  ;;  %1797 = vmatpush.msra.mxu1 %v1759_v31 }
 0x44e   : > { %v1522_v41 = vmul.f32 %v2618_v23, %v1521_v36  ;;  %v1528_v42 = vmul.f32 %v2620_v37, %v1492_v25  ;;  %vm1534_vm12 = vweird.f32 %v2620_v37  ;;  %v1757_v36 = vld [vmem:[%s3534_s14 + $0x28] sm:$0xff] }
 0x44f   : > { %2621 = vrsqrt.f32 %v1493_v38  ;;  %2502 = vmatmul.msk.f32.gmra.mxu0 %vm610_vm0, %v3221_v40  ;;  %vm1535_vm14 = vmor %vm1533_vm13, %vm1534_vm12  ;;  %vm1543_vm2 = vweird.f32 %v1493_v38  ;;  %vm1764_vm13 = vcmask 523264  }
 0x450   : > { %v1526_v18 = vsel %vm1525_vm11, %v2618_v23, %v1522_v41  ;;  %v1529_v43 = vmul.f32 %v2620_v37, %v1528_v42  ;;  %v1754_v41 = vld [vmem:[%s3534_s14 + $0x10] sm:$0xff]  ;;  %v1753_v42 = vld [vmem:[%s3534_s14 + $0x8] sm:$0xff] }
 0x451   : > { %v1579_v45 = vmul.f32 %v1526_v18, %v3149_v26 }
 0x452   : > { %v1530_v46 = vmul.f32 0.5, %v1529_v43  ;;  %v1474_v47 = vpop.xlane.xlu2 %1473  ;;  %v1752_v43 = vld [vmem:[%s3534_s14] sm:$0xff] }
 0x453   : > { %v1486_v48 = vmul.f32 %v1474_v47, %v3132_v0  ;;  %v1590_v49 = vmul.f32 %v3202_v5, %v1579_v45 }
 0x454   : > { %v1531_v50 = vsub.f32 1.5, %v1530_v46 }
 0x455   : > { %v2622_v8 = vpop.eup %2621  ;;  %v1494_v52 = vadd.f32 1e-05, %v1486_v48  ;;  %v3229_v53 = vadd.f32 %v3208_v7, %v1590_v49 }
 0x456   : > { %v1532_v54 = vmul.f32 %v2620_v37, %v1531_v50  ;;  %v1538_v9 = vmul.f32 %v2622_v8, %v1493_v38  ;;  %vm1544_vm15 = vweird.f32 %v2622_v8  ;;  %v1755_v38 = vld [vmem:[%s3534_s14 + $0x18] sm:$0xff]  ;;  %v3290_v50 = vld [vmem:[%s3533_s13] ss:$0 sm:$0xff] }
 0x457   : > { %2623 = vrsqrt.f32 %v1494_v52  ;;  %2503 = vmatmul.msk.f32.gmra.mxu0 %vm610_vm0, %v3229_v53  ;;  %vm1545_vm3 = vmor %vm1543_vm2, %vm1544_vm15  ;;  %vm1553_vm5 = vweird.f32 %v1494_v52 }
 0x458   : > { %v1536_v26 = vsel %vm1535_vm14, %v2620_v37, %v1532_v54  ;;  %v1539_v55 = vmul.f32 %v2622_v8, %v1538_v9  ;;  %v1756_v37 = vld [vmem:[%s3534_s14 + $0x20] sm:$0xff] }
 0x459   : > { %v1580_v51 = vmul.f32 %v1536_v26, %v3155_v29 }
 0x45a   : > { %v1540_v56 = vmul.f32 0.5, %v1539_v55  ;;  %v1477_v58 = vpop.xlane.xlu0 %1476 }
 0x45b   : > { %v1487_v59 = vmul.f32 %v1477_v58, %v3132_v0  ;;  %v1591_v60 = vmul.f32 %v3202_v5, %v1580_v51 }
 0x45c   : > { %v1541_v11 = vsub.f32 1.5, %v1540_v56 }
 0x45d   : > { %v2624_v62 = vpop.eup %2623  ;;  %v1495_v63 = vadd.f32 1e-05, %v1487_v59  ;;  %v3237_v12 = vadd.f32 %v3208_v7, %v1591_v60 }
 0x45e   : > { %v1542_v61 = vmul.f32 %v2622_v8, %v1541_v11  ;;  %v1548_v57 = vmul.f32 %v2624_v62, %v1494_v52  ;;  %vm1554_vm4 = vweird.f32 %v2624_v62 }
 0x45f   : > { %2625 = vrsqrt.f32 %v1495_v63  ;;  %2504 = vmatmul.msk.f32.gmra.mxu0 %vm610_vm0, %v3237_v12  ;;  %vm1555_vm6 = vmor %vm1553_vm5, %vm1554_vm4  ;;  %vm1563_vm8 = vweird.f32 %v1495_v63 }
 0x460   : > { %v1546_v29 = vsel %vm1545_vm3, %v2622_v8, %v1542_v61  ;;  %v1549_v1 = vmul.f32 %v2624_v62, %v1548_v57 }
 0x461   : > { %v1581_v3 = vmul.f32 %v1546_v29, %v3161_v34 }
 0x462   : > { %v1550_v13 = vmul.f32 0.5, %v1549_v1 }
 0x463   : > { %v1592_v4 = vmul.f32 %v3202_v5, %v1581_v3 }
 0x464   : > { %v1551_v14 = vsub.f32 1.5, %v1550_v13 }
 0x465   : > { %v2626_v6 = vpop.eup %2625  ;;  %v3244_v16 = vadd.f32 %v3208_v7, %v1592_v4 }
 0x466   : > { %v1552_v17 = vmul.f32 %v2624_v62, %v1551_v14  ;;  %v1558_v19 = vmul.f32 %v2626_v6, %v1495_v63  ;;  %vm1564_vm7 = vweird.f32 %v2626_v6 }
 0x467   : > { %2505 = vmatmul.msk.f32.gmra.mxu0 %vm610_vm0, %v3244_v16  ;;  %vm1565_vm9 = vmor %vm1563_vm8, %vm1564_vm7 }
 0x468   : > { %v1556_v20 = vsel %vm1555_vm6, %v2624_v62, %v1552_v17  ;;  %v1559_v21 = vmul.f32 %v2626_v6, %v1558_v19 }
 0x469   : > { %v1582_v34 = vmul.f32 %v1556_v20, %v3167_v39 }
 0x46a   : > { %v1560_v22 = vmul.f32 0.5, %v1559_v21 }
 0x46b   : > { %v1593_v23 = vmul.f32 %v3202_v5, %v1582_v34 }
 0x46c   : > { %v1561_v25 = vsub.f32 1.5, %v1560_v22 }
 0x46d   : > { %v3251_v27 = vadd.f32 %v3208_v7, %v1593_v23 }
 0x46e   : > { %v1562_v2 = vmul.f32 %v2626_v6, %v1561_v25 }
 0x46f   : > { %2506 = vmatmul.msk.f32.gmra.mxu0 %vm610_vm0, %v3251_v27 }
 0x470   : > { %v1566_v15 = vsel %vm1565_vm9, %v2626_v6, %v1562_v2 }
 0x471   : > { %v1583_v28 = vmul.f32 %v1566_v15, %v3173_v44  ;;  %v1758_v44 = vld [vmem:[%s3534_s14 + $0x30] sm:$0xff] }
 0x472   : > { %1798 = vmatpush.msra.mxu1 %v1758_v44 }
 0x473   : > { %v1594_v30 = vmul.f32 %v3202_v5, %v1583_v28 }
 0x474   : > { %1799 = vmatpush.msra.mxu1 %v1757_v36 }
 0x475   : > { %v3258_v39 = vadd.f32 %v3208_v7, %v1594_v30 }
 0x476   : > { %1800 = vmatpush.msra.mxu1 %v1756_v37 }
 0x477   : > { %2507 = vmatmul.msk.f32.gmra.mxu0 %vm610_vm0, %v3258_v39 }
 0x478   : > { %1801 = vmatpush.msra.mxu1 %v1755_v38 }
 0x47a   : > { %1802 = vmatpush.msra.mxu1 %v1754_v41 }
 0x47c   : > { %1803 = vmatpush.msra.mxu1 %v1753_v42 }
 0x47e   : > { %1804 = vmatpush.msra.mxu1 %v1752_v43 }
 0x4ad   : > { %v1480_v32 = vpop.xlane.xlu1 %1479 }
 0x4ae   : > { %v1488_v33 = vmul.f32 %v1480_v32, %v3132_v0 }
 0x4b0   : > { %v1496_v35 = vadd.f32 1e-05, %v1488_v33 }
 0x4b2   : > { %2627 = vrsqrt.f32 %v1496_v35  ;;  %vm1573_vm11 = vweird.f32 %v1496_v35 }
 0x4b8   : > { %v2628_v18 = vpop.eup %2627 }
 0x4b9   : > { %v1568_v45 = vmul.f32 %v2628_v18, %v1496_v35  ;;  %vm1574_vm10 = vweird.f32 %v2628_v18 }
 0x4ba   : > { %vm1575_vm12 = vmor %vm1573_vm11, %vm1574_vm10 }
 0x4bb   : > { %v1569_v46 = vmul.f32 %v2628_v18, %v1568_v45 }
 0x4bd   : > { %v1570_v47 = vmul.f32 0.5, %v1569_v46 }
 0x4bf   : > { %v1571_v48 = vsub.f32 1.5, %v1570_v47 }
 0x4c1   : > { %v1572_v49 = vmul.f32 %v2628_v18, %v1571_v48 }
 0x4c3   : > { %v1576_v8 = vsel %vm1575_vm12, %v2628_v18, %v1572_v49 }
 0x4c4   : > { %v1656_v52 = vpop.f32.mrf.mxu0  ;;  %v1584_v54 = vmul.f32 %v1576_v8, %v3193_v10 }
 0x4c5   : > { %v1657_v9 = vadd.f32 %v3290_v50, %v1656_v52 }
 0x4c6   : > { %v1595_v26 = vmul.f32 %v3202_v5, %v1584_v54 }
 0x4c7   : > { %v1688_v55 = vmul.f32 0.044715, %v1657_v9  ;;  %v1680_v13 = vmul.f32 0.5, %v1657_v9 }
 0x4c8   : > { %v3296_v51 = vadd.f32 %v3208_v7, %v1595_v26 }
 0x4c9   : > { %v1696_v56 = vmul.f32 %v1688_v55, %v1657_v9 }
 0x4ca   : > { %2508 = vmatmul.msk.f32.gmra.mxu0 %vm610_vm0, %v3296_v51 }
 0x4cb   : > { %v1704_v58 = vmul.f32 %v1696_v56, %v1657_v9 }
 0x4cc   : > { %v1659_v59 = vpop.f32.mrf.mxu0 }
 0x4cd   : > { %v1712_v60 = vadd.f32 %v1704_v58, %v1657_v9  ;;  %v1660_v11 = vadd.f32 %v3290_v50, %v1659_v59 }
 0x4cf   : > { %v1720_v62 = vmul.f32 0.7978846, %v1712_v60  ;;  %v1689_v63 = vmul.f32 0.044715, %v1660_v11  ;;  %v1681_v25 = vmul.f32 0.5, %v1660_v11 }
 0x4d1   : > { %2629 = vtanh.f32 %v1720_v62  ;;  %v1697_v10 = vmul.f32 %v1689_v63, %v1660_v11 }
 0x4d3   : > { %v1705_v61 = vmul.f32 %v1697_v10, %v1660_v11 }
 0x4d4   : > { %v1662_v57 = vpop.f32.mrf.mxu0 }
 0x4d5   : > { %v1663_v5 = vadd.f32 %v3290_v50, %v1662_v57  ;;  %v1713_v29 = vadd.f32 %v1705_v61, %v1660_v11 }
 0x4d7   : > { %v2630_v7 = vpop.eup %2629  ;;  %v1690_v1 = vmul.f32 0.044715, %v1663_v5  ;;  %v1721_v3 = vmul.f32 0.7978846, %v1713_v29  ;;  %v1682_v37 = vmul.f32 0.5, %v1663_v5 }
 0x4d8   : > { %v1736_v4 = vadd.f32 1.0, %v2630_v7 }
 0x4d9   : > { %2631 = vtanh.f32 %v1721_v3  ;;  %v1698_v14 = vmul.f32 %v1690_v1, %v1663_v5 }
 0x4da   : > { %v1744_v6 = vmul.f32 %v1736_v4, %v1680_v13 }
 0x4db   : > { %v1706_v17 = vmul.f32 %v1698_v14, %v1663_v5 }
 0x4dc   : > { %v1665_v19 = vpop.f32.mrf.mxu0  ;;  %2509 = vmatmul.msk.f32.vlgmr.msra.gmra.mxu1 %vm1764_vm13, %v1744_v6 }
 0x4dd   : > { %v1666_v20 = vadd.f32 %v3290_v50, %v1665_v19  ;;  %v1714_v21 = vadd.f32 %v1706_v17, %v1663_v5 }
 0x4df   : > { %v2632_v34 = vpop.eup %2631  ;;  %v1691_v22 = vmul.f32 0.044715, %v1666_v20  ;;  %v1722_v23 = vmul.f32 0.7978846, %v1714_v21  ;;  %v1683_v8 = vmul.f32 0.5, %v1666_v20 }
 0x4e0   : > { %v1737_v2 = vadd.f32 1.0, %v2632_v34 }
 0x4e1   : > { %2633 = vtanh.f32 %v1722_v23  ;;  %v1699_v15 = vmul.f32 %v1691_v22, %v1666_v20 }
 0x4e2   : > { %v1745_v28 = vmul.f32 %v1737_v2, %v1681_v25  ;;  %v2576_v2 = vld [vmem:[%s3535_s15] ss:$0 sm:$0xff] }
 0x4e3   : > { %v1707_v30 = vmul.f32 %v1699_v15, %v1666_v20 }
 0x4e4   : > { %v1668_v31 = vpop.f32.mrf.mxu0  ;;  %2510 = vmatmul.msk.f32.gmra.mxu1 %vm1764_vm13, %v1745_v28 }
 0x4e5   : > { %v1669_v32 = vadd.f32 %v3290_v50, %v1668_v31  ;;  %v1715_v33 = vadd.f32 %v1707_v30, %v1666_v20 }
 0x4e7   : > { %v2634_v44 = vpop.eup %2633  ;;  %v1692_v35 = vmul.f32 0.044715, %v1669_v32  ;;  %v1723_v36 = vmul.f32 0.7978846, %v1715_v33  ;;  %v1684_v62 = vmul.f32 0.5, %v1669_v32 }
 0x4e8   : > { %v1738_v38 = vadd.f32 1.0, %v2634_v44 }
 0x4e9   : > { %2635 = vtanh.f32 %v1723_v36  ;;  %v1700_v41 = vmul.f32 %v1692_v35, %v1669_v32 }
 0x4ea   : > { %v1746_v42 = vmul.f32 %v1738_v38, %v1682_v37 }
 0x4eb   : > { %v1708_v18 = vmul.f32 %v1700_v41, %v1669_v32 }
 0x4ec   : > { %v1671_v43 = vpop.f32.mrf.mxu0  ;;  %2511 = vmatmul.msk.f32.gmra.mxu1 %vm1764_vm13, %v1746_v42 }
 0x4ed   : > { %v1672_v45 = vadd.f32 %v3290_v50, %v1671_v43  ;;  %v1716_v46 = vadd.f32 %v1708_v18, %v1669_v32 }
 0x4ef   : > { %v2636_v47 = vpop.eup %2635  ;;  %v1693_v48 = vmul.f32 0.044715, %v1672_v45  ;;  %v1724_v49 = vmul.f32 0.7978846, %v1716_v46  ;;  %v1685_v1 = vmul.f32 0.5, %v1672_v45 }
 0x4f0   : > { %v1739_v52 = vadd.f32 1.0, %v2636_v47 }
 0x4f1   : > { %2637 = vtanh.f32 %v1724_v49  ;;  %v1701_v54 = vmul.f32 %v1693_v48, %v1672_v45 }
 0x4f2   : > { %v1747_v9 = vmul.f32 %v1739_v52, %v1683_v8 }
 0x4f3   : > { %v1709_v26 = vmul.f32 %v1701_v54, %v1672_v45 }
 0x4f4   : > { %v1674_v55 = vpop.f32.mrf.mxu0  ;;  %2512 = vmatmul.msk.f32.gmra.mxu1 %vm1764_vm13, %v1747_v9 }
 0x4f5   : > { %v1675_v56 = vadd.f32 %v3290_v50, %v1674_v55  ;;  %v1717_v58 = vadd.f32 %v1709_v26, %v1672_v45 }
 0x4f7   : > { %v2638_v59 = vpop.eup %2637  ;;  %v1694_v60 = vmul.f32 0.044715, %v1675_v56  ;;  %v1725_v11 = vmul.f32 0.7978846, %v1717_v58  ;;  %v1686_v14 = vmul.f32 0.5, %v1675_v56 }
 0x4f8   : > { %v1740_v63 = vadd.f32 1.0, %v2638_v59 }
 0x4f9   : > { %2639 = vtanh.f32 %v1725_v11  ;;  %v1702_v10 = vmul.f32 %v1694_v60, %v1675_v56 }
 0x4fa   : > { %v1748_v61 = vmul.f32 %v1740_v63, %v1684_v62 }
 0x4fb   : > { %v1710_v57 = vmul.f32 %v1702_v10, %v1675_v56 }
 0x4fc   : > { %2513 = vmatmul.msk.f32.gmra.mxu1 %vm1764_vm13, %v1748_v61 }
 0x4fd   : > { %v1718_v5 = vadd.f32 %v1710_v57, %v1675_v56 }
 0x4ff   : > { %v2640_v29 = vpop.eup %2639  ;;  %v1726_v7 = vmul.f32 0.7978846, %v1718_v5 }
 0x500   : > { %v1741_v3 = vadd.f32 1.0, %v2640_v29 }
 0x501   : > { %2641 = vtanh.f32 %v1726_v7 }
 0x502   : > { %v1749_v13 = vmul.f32 %v1741_v3, %v1685_v1 }
 0x504   : > { %2514 = vmatmul.msk.f32.gmra.mxu1 %vm1764_vm13, %v1749_v13 }
 0x507   : > { %v2642_v4 = vpop.eup %2641 }
 0x508   : > { %v1742_v6 = vadd.f32 1.0, %v2642_v4 }
 0x50a   : > { %v1750_v17 = vmul.f32 %v1742_v6, %v1686_v14 }
 0x50c   : > { %2515 = vmatmul.msk.f32.gmra.mxu1 %vm1764_vm13, %v1750_v17 }
 0x547   : > { %v1677_v19 = vpop.f32.mrf.mxu0 }
 0x548   : > { %v1678_v20 = vadd.f32 %v3290_v50, %v1677_v19 }
 0x54a   : > { %v1695_v21 = vmul.f32 0.044715, %v1678_v20  ;;  %v1687_v31 = vmul.f32 0.5, %v1678_v20 }
 0x54c   : > { %v1703_v34 = vmul.f32 %v1695_v21, %v1678_v20 }
 0x54e   : > { %v1711_v22 = vmul.f32 %v1703_v34, %v1678_v20 }
 0x550   : > { %v1719_v23 = vadd.f32 %v1711_v22, %v1678_v20 }
 0x552   : > { %v1727_v25 = vmul.f32 0.7978846, %v1719_v23 }
 0x554   : > { %2643 = vtanh.f32 %v1727_v25 }
 0x559   : > { %v1806_v15 = vpop.f32.mrf.mxu1 }
 0x55a   : > { %v2644_v28 = vpop.eup %2643  ;;  %v1807_v30 = vadd.f32 %v2576_v2, %v1806_v15 }
 0x55b   : > { %v1743_v32 = vadd.f32 1.0, %v2644_v28 }
 0x55c   : > { %v1830_v33 = vadd.f32 %v1807_v30, %v3213_v24 }
 0x55d   : > { %v1751_v44 = vmul.f32 %v1743_v32, %v1687_v31 }
 0x55e   : > { %v1840_v50 = vsel %vm610_vm0, %v1830_v33, 0.0 }
 0x55f   : > { %1841 = vadd.xlane.f32.xlu2 %v1840_v50  ;;  %2516 = vmatmul.msk.f32.gmra.mxu1 %vm1764_vm13, %v1751_v44 }
 0x561   : > { %v1809_v35 = vpop.f32.mrf.mxu1 }
 0x562   : > { %v1810_v36 = vadd.f32 %v2576_v2, %v1809_v35 }
 0x564   : > { %v1831_v37 = vadd.f32 %v1810_v36, %v3221_v40 }
 0x566   : > { %v1843_v38 = vsel %vm610_vm0, %v1831_v37, 0.0 }
 0x567   : > { %1844 = vadd.xlane.f32.xlu0 %v1843_v38 }
 0x569   : > { %v1812_v41 = vpop.f32.mrf.mxu1 }
 0x56a   : > { %v1813_v42 = vadd.f32 %v2576_v2, %v1812_v41 }
 0x56c   : > { %v1832_v18 = vadd.f32 %v1813_v42, %v3229_v53 }
 0x56e   : > { %v1846_v43 = vsel %vm610_vm0, %v1832_v18, 0.0 }
 0x56f   : > { %1847 = vadd.xlane.f32.xlu1 %v1846_v43 }
 0x571   : > { %v1815_v24 = vpop.f32.mrf.mxu1 }
 0x572   : > { %v1816_v45 = vadd.f32 %v2576_v2, %v1815_v24 }
 0x574   : > { %v1833_v46 = vadd.f32 %v1816_v45, %v3237_v12 }
 0x576   : > { %v1849_v47 = vsel %vm610_vm0, %v1833_v46, 0.0 }
 0x577   : > { %1850 = vadd.xlane.f32.xlu2 %v1849_v47 }
 0x579   : > { %v1818_v48 = vpop.f32.mrf.mxu1 }
 0x57a   : > { %v1819_v49 = vadd.f32 %v2576_v2, %v1818_v48 }
 0x57c   : > { %v1834_v40 = vadd.f32 %v1819_v49, %v3244_v16 }
 0x57e   : > { %v1852_v8 = vsel %vm610_vm0, %v1834_v40, 0.0 }
 0x57f   : > { %1853 = vadd.xlane.f32.xlu0 %v1852_v8 }
 0x581   : > { %v1821_v52 = vpop.f32.mrf.mxu1 }
 0x582   : > { %v1822_v54 = vadd.f32 %v2576_v2, %v1821_v52 }
 0x584   : > { %v1835_v53 = vadd.f32 %v1822_v54, %v3251_v27 }
 0x586   : > { %v1855_v9 = vsel %vm610_vm0, %v1835_v53, 0.0 }
 0x587   : > { %1856 = vadd.xlane.f32.xlu1 %v1855_v9 }
 0x589   : > { %v1824_v26 = vpop.f32.mrf.mxu1 }
 0x58a   : > { %v1825_v55 = vadd.f32 %v2576_v2, %v1824_v26 }
 0x58c   : > { %v1836_v12 = vadd.f32 %v1825_v55, %v3258_v39 }
 0x58e   : > { %v1858_v56 = vsel %vm610_vm0, %v1836_v12, 0.0 }
 0x58f   : > { %1859 = vadd.xlane.f32.xlu0 %v1858_v56 }
 0x5d2   : > { %v1842_v58 = vpop.xlane.xlu2 %1841 }
 0x5d3   : > { %v1864_v16 = vmul.f32 %v1842_v58, %v3132_v0 }
 0x5d5   : > { %v3333_v59 = vsub.f32 %v1830_v33, %v1864_v16 }
 0x5d7   : > { %v1880_v60 = vmul.f32 %v3333_v59, %v3333_v59 }
 0x5d9   : > { %v1888_v27 = vsel %vm610_vm0, %v1880_v60, 0.0  ;;  %v3394_v60 = vld [vmem:[%s3537_s17] ss:$0 sm:$0xff] }
 0x5da   : > { %v1845_v11 = vpop.xlane.xlu0 %1844  ;;  %1889 = vadd.xlane.f32.xlu2 %v1888_v27 }
 0x5db   : > { %v1865_v62 = vmul.f32 %v1845_v11, %v3132_v0 }
 0x5dc   : > { %v1827_v63 = vpop.f32.mrf.mxu1 }
 0x5dd   : > { %v3339_v10 = vsub.f32 %v1831_v37, %v1865_v62  ;;  %v1828_v39 = vadd.f32 %v2576_v2, %v1827_v63 }
 0x5df   : > { %v1881_v61 = vmul.f32 %v3339_v10, %v3339_v10  ;;  %v1837_v57 = vadd.f32 %v1828_v39, %v3296_v51 }
 0x5e1   : > { %v1891_v5 = vsel %vm610_vm0, %v1881_v61, 0.0  ;;  %v1861_v29 = vsel %vm610_vm0, %v1837_v57, 0.0 }
 0x5e2   : > { %v1848_v7 = vpop.xlane.xlu1 %1847  ;;  %1892 = vadd.xlane.f32.xlu1 %v1891_v5  ;;  %1862 = vadd.xlane.f32.xlu2 %v1861_v29 }
 0x5e3   : > { %v1866_v1 = vmul.f32 %v1848_v7, %v3132_v0 }
 0x5e5   : > { %v3347_v3 = vsub.f32 %v1832_v18, %v1866_v1 }
 0x5e7   : > { %v1882_v13 = vmul.f32 %v3347_v3, %v3347_v3 }
 0x5e9   : > { %v1894_v4 = vsel %vm610_vm0, %v1882_v13, 0.0  ;;  %v3400_v13 = vld [vmem:[%s2981_s24] sm:$0xff]  ;;  %s580_s24 = sand.u32 1, %s2720_s28  }
 0x5ea   : > { %1895 = vadd.xlane.f32.xlu0 %v1894_v4  ;;  %v1851_v14 = vpop.xlane.xlu2 %1850  ;;  %s3472_s25 = sshll.u32 %s580_s24, 3  ;;  %s2351_s29 = scalar_lea.sflag [#allocation3], %s580_s24 }
 0x5eb   : > { %v1867_v51 = vmul.f32 %v1851_v14, %v3132_v0  ;;  %s582_s2 = scalar_lea.vmem [#allocation2], %s3472_s25 }
 0x5ec   : > { %s2363_s19 = sshll.u32 %s582_s2, 4  ;;  %s2364_s19 = int_to_ptr.vmem [resolvable:$true] %s2363_s19 }
 0x5ed   : > { %v3353_v6 = vsub.f32 %v1833_v46, %v1867_v51 }
 0x5ef   : > { %v1883_v17 = vmul.f32 %v3353_v6, %v3353_v6 }
 0x5f1   : > { %v1897_v19 = vsel %vm610_vm0, %v1883_v17, 0.0 }
 0x5f2   : > { %v1854_v20 = vpop.xlane.xlu0 %1853  ;;  %1898 = vadd.xlane.f32.xlu1 %v1897_v19 }
 0x5f3   : > { %v1868_v21 = vmul.f32 %v1854_v20, %v3132_v0 }
 0x5f5   : > { %v3359_v34 = vsub.f32 %v1834_v40, %v1868_v21  ;;  %v2039_v21 = vrot.slane %v3400_v13, 1 }
 0x5f7   : > { %v1884_v22 = vmul.f32 %v3359_v34, %v3359_v34 }
 0x5f9   : > { %v1900_v23 = vsel %vm610_vm0, %v1884_v22, 0.0 }
 0x5fa   : > { %v1857_v25 = vpop.xlane.xlu1 %1856  ;;  %1901 = vadd.xlane.f32.xlu2 %v1900_v23 }
 0x5fb   : > { %v1869_v2 = vmul.f32 %v1857_v25, %v3132_v0 }
 0x5fd   : > { %v3365_v15 = vsub.f32 %v1835_v53, %v1869_v2 }
 0x5ff   : > { %v1885_v28 = vmul.f32 %v3365_v15, %v3365_v15 }
 0x601   : > { %v1903_v30 = vsel %vm610_vm0, %v1885_v28, 0.0 }
 0x602   : > { %v1860_v31 = vpop.xlane.xlu0 %1859  ;;  %1904 = vadd.xlane.f32.xlu0 %v1903_v30 }
 0x603   : > { %v1870_v32 = vmul.f32 %v1860_v31, %v3132_v0 }
 0x605   : > { %v3371_v33 = vsub.f32 %v1836_v12, %v1870_v32  ;;  %v3388_v12 = vld [vmem:[%s3536_s16] ss:$0 sm:$0xff] }
 0x607   : > { %v1886_v44 = vmul.f32 %v3371_v33, %v3371_v33 }
 0x609   : > { %v1906_v50 = vsel %vm610_vm0, %v1886_v44, 0.0 }
 0x60a   : > { %1907 = vadd.xlane.f32.xlu1 %v1906_v50 }
 0x64d   : > { %v1890_v35 = vpop.xlane.xlu2 %1889 }
 0x64e   : > { %v1912_v36 = vmul.f32 %v1890_v35, %v3132_v0 }
 0x650   : > { %v1920_v37 = vadd.f32 1e-05, %v1912_v36 }
 0x652   : > { %2645 = vrsqrt.f32 %v1920_v37  ;;  %vm1934_vm15 = vweird.f32 %v1920_v37 }
 0x655   : > { %v1893_v38 = vpop.xlane.xlu1 %1892  ;;  %v1863_v41 = vpop.xlane.xlu2 %1862 }
 0x656   : > { %v1913_v42 = vmul.f32 %v1893_v38, %v3132_v0  ;;  %v1871_v18 = vmul.f32 %v1863_v41, %v3132_v0 }
 0x658   : > { %v2646_v43 = vpop.eup %2645  ;;  %v1921_v24 = vadd.f32 1e-05, %v1913_v42  ;;  %v3379_v45 = vsub.f32 %v1837_v57, %v1871_v18 }
 0x659   : > { %v1929_v46 = vmul.f32 %v2646_v43, %v1920_v37  ;;  %vm1935_vm14 = vweird.f32 %v2646_v43  ;;  %v2040_v37 = vrot.slane %v3400_v13, 2 }
 0x65a   : > { %2647 = vrsqrt.f32 %v1921_v24  ;;  %v1887_v47 = vmul.f32 %v3379_v45, %v3379_v45  ;;  %vm1936_vm2 = vmor %vm1934_vm15, %vm1935_vm14  ;;  %vm1944_vm4 = vweird.f32 %v1921_v24 }
 0x65b   : > { %v1930_v48 = vmul.f32 %v2646_v43, %v1929_v46  ;;  %v2222_v46 = vsel %vm1046_vm1, %v3400_v13, 0.0 }
 0x65c   : > { %v1909_v49 = vsel %vm610_vm0, %v1887_v47, 0.0  ;;  %2223 = vadd.xlane.f32.xlu0 %v2222_v46 }
 0x65d   : > { %v1931_v40 = vmul.f32 0.5, %v1930_v48  ;;  %v1896_v8 = vpop.xlane.xlu0 %1895  ;;  %1910 = vadd.xlane.f32.xlu2 %v1909_v49 }
 0x65e   : > { %v1914_v52 = vmul.f32 %v1896_v8, %v3132_v0 }
 0x65f   : > { %v1932_v54 = vsub.f32 1.5, %v1931_v40 }
 0x660   : > { %v2648_v53 = vpop.eup %2647  ;;  %v1922_v9 = vadd.f32 1e-05, %v1914_v52 }
 0x661   : > { %v1933_v26 = vmul.f32 %v2646_v43, %v1932_v54  ;;  %v1939_v55 = vmul.f32 %v2648_v53, %v1921_v24  ;;  %vm1945_vm3 = vweird.f32 %v2648_v53  ;;  %v2041_v54 = vrot.slane %v3400_v13, 3 }
 0x662   : > { %2649 = vrsqrt.f32 %v1922_v9  ;;  %vm1946_vm5 = vmor %vm1944_vm4, %vm1945_vm3  ;;  %vm1954_vm7 = vweird.f32 %v1922_v9 }
 0x663   : > { %v1937_v56 = vsel %vm1936_vm2, %v2646_v43, %v1933_v26  ;;  %v1940_v58 = vmul.f32 %v2648_v53, %v1939_v55 }
 0x664   : > { %v2008_v16 = vmul.f32 %v1937_v56, %v3333_v59 }
 0x665   : > { %v1941_v27 = vmul.f32 0.5, %v1940_v58  ;;  %v1899_v11 = vpop.xlane.xlu1 %1898 }
 0x666   : > { %v1915_v62 = vmul.f32 %v1899_v11, %v3132_v0  ;;  %v2019_v63 = vmul.f32 %v3388_v12, %v2008_v16 }
 0x667   : > { %v1942_v39 = vsub.f32 1.5, %v1941_v27 }
 0x668   : > { %v2650_v61 = vpop.eup %2649  ;;  %v1923_v57 = vadd.f32 1e-05, %v1915_v62  ;;  %v2030_v5 = vadd.f32 %v3394_v60, %v2019_v63  ;;  %v2042_v63 = vrot.slane %v3400_v13, 4 }
 0x669   : > { %v1943_v29 = vmul.f32 %v2648_v53, %v1942_v39  ;;  %v1949_v59 = vmul.f32 %v2650_v61, %v1922_v9  ;;  %vm1955_vm6 = vweird.f32 %v2650_v61 }
 0x66a   : > { %2651 = vrsqrt.f32 %v1923_v57  ;;  %2063 = vmatpush.msrb.mxu2 %v2030_v5  ;;  %vm1956_vm8 = vmor %vm1954_vm7, %vm1955_vm6  ;;  %vm1964_vm10 = vweird.f32 %v1923_v57 }
 0x66b   : > { %v1947_v7 = vsel %vm1946_vm5, %v2648_v53, %v1943_v29  ;;  %v1950_v1 = vmul.f32 %v2650_v61, %v1949_v59  ;;  %2517 = vmatmul.msk.f32.vlgmr.msrb.gmra.mxu2 %vm1046_vm1, %v3400_v13 }
 0x66c   : > { %v2009_v4 = vmul.f32 %v1947_v7, %v3339_v10 }
 0x66d   : > { %v1951_v14 = vmul.f32 0.5, %v1950_v1  ;;  %v1902_v51 = vpop.xlane.xlu2 %1901 }
 0x66e   : > { %v1916_v17 = vmul.f32 %v1902_v51, %v3132_v0  ;;  %v2020_v19 = vmul.f32 %v3388_v12, %v2009_v4 }
 0x66f   : > { %v1952_v20 = vsub.f32 1.5, %v1951_v14  ;;  %v2043_v14 = vrot.slane %v3400_v13, 5 }
 0x670   : > { %v2652_v22 = vpop.eup %2651  ;;  %v1924_v23 = vadd.f32 1e-05, %v1916_v17  ;;  %v2031_v25 = vadd.f32 %v3394_v60, %v2020_v19 }
 0x671   : > { %v1953_v2 = vmul.f32 %v2650_v61, %v1952_v20  ;;  %v1959_v28 = vmul.f32 %v2652_v22, %v1923_v57  ;;  %vm1965_vm9 = vweird.f32 %v2652_v22 }
 0x672   : > { %2653 = vrsqrt.f32 %v1924_v23  ;;  %2085 = vmatpush.msra.mxu2 %v2031_v25  ;;  %vm1966_vm11 = vmor %vm1964_vm10, %vm1965_vm9  ;;  %vm1974_vm13 = vweird.f32 %v1924_v23  ;;  %vm2270_vm10 = vcmask 1042434  }
 0x673   : > { %v1957_v10 = vsel %vm1956_vm8, %v2650_v61, %v1953_v2  ;;  %v1960_v30 = vmul.f32 %v2652_v22, %v1959_v28  ;;  %2518 = vmatmul.msk.f32.vlgmr.msra.gmra.mxu2 %vm1046_vm1, %v2039_v21  ;;  %v2044_v21 = vrot.slane %v3400_v13, 6 }
 0x674   : > { %v2010_v31 = vmul.f32 %v1957_v10, %v3347_v3 }
 0x675   : > { %v1961_v32 = vmul.f32 0.5, %v1960_v30  ;;  %v1905_v44 = vpop.xlane.xlu0 %1904 }
 0x676   : > { %v1917_v50 = vmul.f32 %v1905_v44, %v3132_v0  ;;  %v2021_v35 = vmul.f32 %v3388_v12, %v2010_v31 }
 0x677   : > { %v1962_v36 = vsub.f32 1.5, %v1961_v32 }
 0x678   : > { %v2654_v38 = vpop.eup %2653  ;;  %v1925_v41 = vadd.f32 1e-05, %v1917_v50  ;;  %v2032_v42 = vadd.f32 %v3394_v60, %v2021_v35 }
 0x679   : > { %v1963_v18 = vmul.f32 %v2652_v22, %v1962_v36  ;;  %v1969_v43 = vmul.f32 %v2654_v38, %v1924_v23  ;;  %vm1975_vm12 = vweird.f32 %v2654_v38  ;;  %v2045_v36 = vrot.slane %v3400_v13, 7 }
 0x67a   : > { %2655 = vrsqrt.f32 %v1925_v41  ;;  %2107 = vmatpush.msrb.mxu2 %v2032_v42  ;;  %vm1976_vm14 = vmor %vm1974_vm13, %vm1975_vm12  ;;  %vm1984_vm2 = vweird.f32 %v1925_v41  ;;  %vm2276_vm12 = vcmask 1044484   ;;  %vm2279_vm13 = vcmask 1045509  }
 0x67b   : > { %v1967_v3 = vsel %vm1966_vm11, %v2652_v22, %v1963_v18  ;;  %v1970_v24 = vmul.f32 %v2654_v38, %v1969_v43  ;;  %2519 = vmatmul.msk.f32.vlgmr.msrb.gmra.mxu2 %vm1046_vm1, %v2040_v37  ;;  %vm2273_vm11 = vcmask 1043459  }
 0x67c   : > { %v2011_v47 = vmul.f32 %v1967_v3, %v3353_v6 }
 0x67d   : > { %v1971_v48 = vmul.f32 0.5, %v1970_v24  ;;  %v1908_v49 = vpop.xlane.xlu1 %1907 }
 0x67e   : > { %v1918_v40 = vmul.f32 %v1908_v49, %v3132_v0  ;;  %v2022_v8 = vmul.f32 %v3388_v12, %v2011_v47 }
 0x67f   : > { %v1972_v52 = vsub.f32 1.5, %v1971_v48 }
 0x680   : > { %v2656_v53 = vpop.eup %2655  ;;  %v1926_v9 = vadd.f32 1e-05, %v1918_v40  ;;  %v2033_v26 = vadd.f32 %v3394_v60, %v2022_v8 }
 0x681   : > { %v1973_v55 = vmul.f32 %v2654_v38, %v1972_v52  ;;  %v1979_v56 = vmul.f32 %v2656_v53, %v1925_v41  ;;  %vm1985_vm15 = vweird.f32 %v2656_v53 }
 0x682   : > { %2657 = vrsqrt.f32 %v1926_v9  ;;  %2129 = vmatpush.msra.mxu2 %v2033_v26  ;;  %vm1986_vm3 = vmor %vm1984_vm2, %vm1985_vm15  ;;  %vm1994_vm5 = vweird.f32 %v1926_v9  ;;  %vm2285_vm15 = vcmask 1047559  }
 0x683   : > { %v1977_v6 = vsel %vm1976_vm14, %v2654_v38, %v1973_v55  ;;  %v1980_v58 = vmul.f32 %v2656_v53, %v1979_v56  ;;  %2520 = vmatmul.msk.f32.vlgmr.msra.gmra.mxu2 %vm1046_vm1, %v2041_v54  ;;  %vm2282_vm14 = vcmask 1046534  }
 0x684   : > { %v2012_v16 = vmul.f32 %v1977_v6, %v3359_v34 }
 0x685   : > { %v1981_v27 = vmul.f32 0.5, %v1980_v58 }
 0x686   : > { %v2023_v11 = vmul.f32 %v3388_v12, %v2012_v16 }
 0x687   : > { %v1982_v62 = vsub.f32 1.5, %v1981_v27 }
 0x688   : > { %v2658_v39 = vpop.eup %2657  ;;  %v2034_v61 = vadd.f32 %v3394_v60, %v2023_v11 }
 0x689   : > { %v1983_v57 = vmul.f32 %v2656_v53, %v1982_v62  ;;  %v1989_v5 = vmul.f32 %v2658_v39, %v1926_v9  ;;  %vm1995_vm4 = vweird.f32 %v2658_v39 }
 0x68a   : > { %2151 = vmatpush.msrb.mxu2 %v2034_v61  ;;  %vm1996_vm6 = vmor %vm1994_vm5, %vm1995_vm4 }
 0x68b   : > { %v1987_v29 = vsel %vm1986_vm3, %v2656_v53, %v1983_v57  ;;  %v1990_v59 = vmul.f32 %v2658_v39, %v1989_v5  ;;  %2521 = vmatmul.msk.f32.vlgmr.msrb.gmra.mxu2 %vm1046_vm1, %v2042_v63 }
 0x68c   : > { %v2013_v34 = vmul.f32 %v1987_v29, %v3365_v15 }
 0x68d   : > { %v1991_v7 = vmul.f32 0.5, %v1990_v59 }
 0x68e   : > { %v2024_v1 = vmul.f32 %v3388_v12, %v2013_v34 }
 0x68f   : > { %v1992_v4 = vsub.f32 1.5, %v1991_v7 }
 0x690   : > { %v2035_v51 = vadd.f32 %v3394_v60, %v2024_v1 }
 0x691   : > { %v1993_v17 = vmul.f32 %v2658_v39, %v1992_v4 }
 0x692   : > { %2173 = vmatpush.msra.mxu2 %v2035_v51 }
 0x693   : > { %v1997_v19 = vsel %vm1996_vm6, %v2658_v39, %v1993_v17  ;;  %2522 = vmatmul.msk.f32.vlgmr.msra.gmra.mxu2 %vm1046_vm1, %v2043_v14 }
 0x694   : > { %v2014_v20 = vmul.f32 %v1997_v19, %v3371_v33 }
 0x696   : > { %v2025_v15 = vmul.f32 %v3388_v12, %v2014_v20 }
 0x698   : > { %v2036_v22 = vadd.f32 %v3394_v60, %v2025_v15 }
 0x69a   : > { %2195 = vmatpush.msrb.mxu2 %v2036_v22 }
 0x69b   : > { %2523 = vmatmul.msk.f32.vlgmr.msrb.gmra.mxu2 %vm1046_vm1, %v2044_v21 }
 0x6cf   : > { %v2224_v18 = vpop.xlane.xlu0 %2223 }
 0x6d0   : > { %v1911_v23 = vpop.xlane.xlu2 %1910 }
 0x6d1   : > { %v1919_v25 = vmul.f32 %v1911_v23, %v3132_v0 }
 0x6d3   : > { %v1927_v2 = vadd.f32 1e-05, %v1919_v25 }
 0x6d5   : > { %2659 = vrsqrt.f32 %v1927_v2  ;;  %vm2004_vm8 = vweird.f32 %v1927_v2 }
 0x6d6   : > { %2661 = vrcp.f32 %v2224_v18 }
 0x6db   : > { %v2660_v28 = vpop.eup %2659 }
 0x6dc   : > { %v1999_v10 = vmul.f32 %v2660_v28, %v1927_v2  ;;  %vm2005_vm7 = vweird.f32 %v2660_v28  ;;  %v2662_v3 = vpop.eup %2661 }
 0x6dd   : > { %vm2006_vm9 = vmor %vm2004_vm8, %vm2005_vm7  ;;  %v2227_v24 = vrot.slane %v2662_v3, 1  ;;  %v2228_v46 = vrot.slane %v2662_v3, 2  ;;  %v2229_v47 = vrot.slane %v2662_v3, 3  ;;  %v2230_v49 = vrot.slane %v2662_v3, 4 }
 0x6de   : > { %v2000_v30 = vmul.f32 %v2660_v28, %v1999_v10  ;;  %v2231_v52 = vrot.slane %v2662_v3, 5  ;;  %v2232_v55 = vrot.slane %v2662_v3, 6  ;;  %v2233_v59 = vrot.slane %v2662_v3, 7 }
 0x6e0   : > { %v2001_v31 = vmul.f32 0.5, %v2000_v30 }
 0x6e2   : > { %v2002_v32 = vsub.f32 1.5, %v2001_v31 }
 0x6e4   : > { %v2003_v33 = vmul.f32 %v2660_v28, %v2002_v32 }
 0x6e6   : > { %v2007_v44 = vsel %vm2006_vm9, %v2660_v28, %v2003_v33 }
 0x6e7   : > { %v2015_v50 = vmul.f32 %v2007_v44, %v3379_v45 }
 0x6e9   : > { %v2026_v35 = vmul.f32 %v3388_v12, %v2015_v50 }
 0x6eb   : > { %v2037_v0 = vadd.f32 %v3394_v60, %v2026_v35 }
 0x6ed   : > { %2217 = vmatpush.msra.mxu2 %v2037_v0 }
 0x6ee   : > { %2524 = vmatmul.msk.f32.vlgmr.msra.gmra.mxu2 %vm1046_vm1, %v2045_v36  ;;  %v2065_v37 = vpop.f32.mrf.mxu2  ;;  %vm2267_vm1 = vcmask 1041409  }
 0x6ef   : > { %v3449_v60 = vmul.f32 %v2662_v3, %v2065_v37 }
 0x6f1   : > { %v2250_v54 = vmul.f32 %v3449_v60, %v3449_v60 }
 0x6f6   : > { %v2087_v38 = vpop.f32.mrf.mxu2 }
 0x6f7   : > { %v3445_v45 = vmul.f32 %v2227_v24, %v2087_v38 }
 0x6f9   : > { %v2251_v48 = vmul.f32 %v3445_v45, %v3445_v45 }
 0x6fb   : > { %v2266_v53 = vrot.slane %v2251_v48, 7 }
 0x6fd   : > { %v2268_v16 = vsel %vm2267_vm1, %v2266_v53, %v2250_v54 }
 0x6fe   : > { %v2109_v41 = vpop.f32.mrf.mxu2 }
 0x6ff   : > { %v3447_v13 = vmul.f32 %v2228_v46, %v2109_v41 }
 0x701   : > { %v2252_v8 = vmul.f32 %v3447_v13, %v3447_v13 }
 0x703   : > { %v2269_v56 = vrot.slane %v2252_v8, 6 }
 0x705   : > { %v2271_v63 = vsel %vm2270_vm10, %v2269_v56, %v2268_v16 }
 0x706   : > { %v2131_v42 = vpop.f32.mrf.mxu2 }
 0x707   : > { %v3453_v40 = vmul.f32 %v2229_v47, %v2131_v42 }
 0x709   : > { %v2253_v26 = vmul.f32 %v3453_v40, %v3453_v40 }
 0x70b   : > { %v2272_v11 = vrot.slane %v2253_v26, 5 }
 0x70d   : > { %v2274_v57 = vsel %vm2273_vm11, %v2272_v11, %v2271_v63 }
 0x70e   : > { %v2153_v43 = vpop.f32.mrf.mxu2 }
 0x70f   : > { %v2246_v9 = vmul.f32 %v2230_v49, %v2153_v43 }
 0x711   : > { %v2254_v27 = vmul.f32 %v2246_v9, %v2246_v9 }
 0x713   : > { %v2275_v61 = vrot.slane %v2254_v27, 4 }
 0x715   : > { %v2277_v7 = vsel %vm2276_vm12, %v2275_v61, %v2274_v57 }
 0x716   : > { %v2175_v12 = vpop.f32.mrf.mxu2 }
 0x717   : > { %v2247_v6 = vmul.f32 %v2231_v52, %v2175_v12 }
 0x719   : > { %v2255_v39 = vmul.f32 %v2247_v6, %v2247_v6 }
 0x71b   : > { %v2278_v29 = vrot.slane %v2255_v39, 3 }
 0x71d   : > { %v2280_v51 = vsel %vm2279_vm13, %v2278_v29, %v2277_v7 }
 0x71e   : > { %v2197_v58 = vpop.f32.mrf.mxu2 }
 0x71f   : > { %v2248_v62 = vmul.f32 %v2232_v55, %v2197_v58 }
 0x721   : > { %v2256_v5 = vmul.f32 %v2248_v62, %v2248_v62 }
 0x723   : > { %v2281_v4 = vrot.slane %v2256_v5, 2 }
 0x725   : > { %v2283_v19 = vsel %vm2282_vm14, %v2281_v4, %v2280_v51 }
 0x771   : > { %v2219_v34 = vpop.f32.mrf.mxu2 }
 0x772   : > { %v2249_v1 = vmul.f32 %v2233_v59, %v2219_v34 }
 0x774   : > { %v2257_v14 = vmul.f32 %v2249_v1, %v2249_v1 }
 0x776   : > { %v2284_v17 = vrot.slane %v2257_v14, 1 }
 0x778   : > { %v2286_v20 = vsel %vm2285_vm15, %v2284_v17, %v2283_v19 }
 0x779   : > { %v2288_v15 = vsel %vm610_vm0, %v2286_v20, 0.0 }
 0x77a   : > { %2289 = vadd.xlane.f32.xlu1 %v2288_v15 }
 0x7ed   : > { %v2290_v21 = vpop.xlane.xlu1 %2289 }
 0x7ee   : > { %v2291_v22 = vmax.f32 %v2290_v21, 1e-24 }
 0x7f0   : > { %2663 = vrsqrt.f32 %v2291_v22  ;;  %vm2298_vm3 = vweird.f32 %v2291_v22 }
 0x7f6   : > { %v2664_v23 = vpop.eup %2663 }
 0x7f7   : > { %v2293_v25 = vmul.f32 %v2664_v23, %v2291_v22  ;;  %vm2299_vm2 = vweird.f32 %v2664_v23 }
 0x7f8   : > { %vm2300_vm4 = vmor %vm2298_vm3, %vm2299_vm2 }
 0x7f9   : > { %v2294_v2 = vmul.f32 %v2664_v23, %v2293_v25 }
 0x7fb   : > { %v2295_v28 = vmul.f32 0.5, %v2294_v2 }
 0x7fd   : > { %v2296_v10 = vsub.f32 1.5, %v2295_v28 }
 0x7ff   : > { %v2297_v30 = vmul.f32 %v2664_v23, %v2296_v10 }
 0x801   : > { %v2301_v31 = vsel %vm2300_vm4, %v2664_v23, %v2297_v30 }
 0x802   : > { %v2303_v32 = vrot.slane %v2301_v31, 1  ;;  %v2304_v33 = vrot.slane %v2301_v31, 2  ;;  %v2305_v44 = vrot.slane %v2301_v31, 3  ;;  %v2306_v50 = vrot.slane %v2301_v31, 4 }
 0x803   : > { %v2307_v35 = vrot.slane %v2301_v31, 5  ;;  %v2308_v36 = vrot.slane %v2301_v31, 6  ;;  %v2309_v0 = vrot.slane %v2301_v31, 7  ;;  %v2318_v18 = vmul.f32 %v2301_v31, %v3449_v60 }
 0x804   : > { %v2319_v37 = vmul.f32 %v2303_v32, %v3445_v45  ;;  %v2320_v38 = vmul.f32 %v2304_v33, %v3447_v13  ;;  %v2321_v41 = vmul.f32 %v2305_v44, %v3453_v40  ;;  %v2322_v42 = vmul.f32 %v2306_v50, %v2246_v9 }
 0x805   : > { %v2323_v43 = vmul.f32 %v2307_v35, %v2247_v6  ;;  %v2324_v46 = vmul.f32 %v2308_v36, %v2248_v62  ;;  %v2325_v12 = vmul.f32 %v2309_v0, %v2249_v1 }
 0x806   : > { %v2334_v3 = vrot.slane %v2319_v37, 7  ;;  %v2336_v24 = vrot.slane %v2320_v38, 6  ;;  %v2338_v45 = vrot.slane %v2321_v41, 5  ;;  %v2340_v48 = vrot.slane %v2322_v42, 4 }
 0x807   : > { %v2342_v40 = vrot.slane %v2323_v43, 3  ;;  %v2344_v8 = vrot.slane %v2324_v46, 2  ;;  %v2346_v54 = vrot.slane %v2325_v12, 1 }
 0x808   : > { %v2335_v47 = vsel %vm2267_vm1, %v2334_v3, %v2318_v18 }
 0x809   : > { %v2337_v13 = vsel %vm2270_vm10, %v2336_v24, %v2335_v47 }
 0x80a   : > { %v2339_v49 = vsel %vm2273_vm11, %v2338_v45, %v2337_v13 }
 0x80b   : > { %v2341_v60 = vsel %vm2276_vm12, %v2340_v48, %v2339_v49 }
 0x80c   : > { %v2343_v52 = vsel %vm2279_vm13, %v2342_v40, %v2341_v60 }
 0x80d   : > { %v2345_v53 = vsel %vm2282_vm14, %v2344_v8, %v2343_v52 }
 0x80e   : > { %v2347_v9 = vsel %vm2285_vm15, %v2346_v54, %v2345_v53 }
 0x80f   : > { %2349 = vst.msk [vmem:[%s582_s2] sm:$0xff] %vm610_vm0, %v2347_v9 }
 0x810   : > { %2693 = shalt.err (!%p2690_p4)
}
 0x811   : > { %2529 = dma.vmem_to_hbm [thread:$0]  (%p2864_p5), %s2364_s19, 128, %s2366_s21, %s2351_s29  }
 0x812 PF: > { %s3568_s24 = sld [smem:[#allocation7_spill]] }
 0x813   : > { %s3569_s2 = sld [smem:[#allocation5_spill]] }
 0x818   : > { %p2535_p7 = scmp.ge.s32.totalorder %s3568_s24, 2 }
 0x819   : > { %s2377_s4 = sand.u32 1, %s3569_s2  }
 0x81a   : > { %p2532_p8 = pnand %p2535_p7, %p2868_p6  ;;  %s2378_s0 = scalar_lea.sflag [#allocation3], %s2377_s4 }
 0x81c   : > { %p2533_p9 = pneg %p2532_p8 }
 0x81e   : > { %2711 = dma.done.wait (%p2533_p9), %s2378_s0, 128  }
 0x81f   : > { %2713 = vsyncadd (%p2533_p9), %s2378_s0, 4294967168  ;;  %s3571_s30 = sld [smem:[#allocation8_spill]]  ;;  %s3574_s27 = smov %s2720_s28 }
 0x820   : > { %s3572_s1 = sld [smem:[#allocation6_spill]] }
 0x821   : > { %s3573_s29 = sld [smem:[#allocation9_spill]] }
 0x825   : > { %p28_p10 = scmp.ge.s32.totalorder %s3571_s30, 4  }
 0x826   : > { %s3575_s28 = smov %s3572_s1 }
 0x827   :  { %30 = sbr.rel (!%p28_p10) target bundleno = 9 (0x9), region = 130 }
 0x82c   :  { %2384 = vsyncpa [#allocation3], 1 }
 0x82d   :  { %2386 = vsyncpa [#allocation3 + $0x1], 1 }

</bundles_post_ra>
